<compile_context>
chip_gen: v5e
topology: v5e:2x2
jax: 0.10.0
libtpu: 0.0.40
codegen_flags: <defaults>
</compile_context>

<pallas_src>
import functools
import math

import jax
import jax.numpy as jnp
from jax.experimental import pallas as pl
from jax.experimental.pallas import tpu as pltpu


def _patch_merge_kernel(x_ref, w_ref, bias_ref, o_ref, *, eps):
    # x_ref:    (tr, 2, Wc, 2C)   [:, 0] = even input row -> [x0 | x2]
    #                             [:, 1] = odd  input row -> [x1 | x3]
    # w_ref:    (2, 2C, Co)       gamma-folded halves of W^T (matmul dtype)
    # bias_ref: (1, Co)           beta @ W^T, f32
    # o_ref:    (tr*Wc, Co)       token-major output tile
    a = x_ref[:, 0, :, :].astype(jnp.float32)          # (tr, Wc, 2C)
    b = x_ref[:, 1, :, :].astype(jnp.float32)          # (tr, Wc, 2C)
    inv_4c = 1.0 / (a.shape[-1] + b.shape[-1])

    # LayerNorm stats over the (virtual) 4C channel axis, computed piecewise.
    mean = (jnp.sum(a, axis=-1, keepdims=True)
            + jnp.sum(b, axis=-1, keepdims=True)) * inv_4c
    ca = a - mean
    cb = b - mean
    var = (jnp.sum(ca * ca, axis=-1, keepdims=True)
           + jnp.sum(cb * cb, axis=-1, keepdims=True)) * inv_4c
    inv = jax.lax.rsqrt(var + eps)                     # (tr, Wc, 1) per token

    tr, wc, twoc = ca.shape
    n = tr * wc
    mm_dtype = w_ref.dtype
    # TODO(synk): a rank-3 lax.dot_general ('rwc,cd->rwd') would avoid these
    # flattens; kept as cast-then-reshape + 2-D dots (proven Mosaic lowering),
    # and the cast-before-reshape keeps any relayout in the narrow dtype.
    ca2 = ca.astype(mm_dtype).reshape(n, twoc)
    cb2 = cb.astype(mm_dtype).reshape(n, twoc)
    acc = jnp.dot(ca2, w_ref[0], preferred_element_type=jnp.float32)
    acc = acc + jnp.dot(cb2, w_ref[1], preferred_element_type=jnp.float32)
    # gamma already folded into w_ref, beta into bias_ref; apply deferred inv.
    o_ref[...] = (acc * inv.reshape(n, 1) + bias_ref[...]).astype(o_ref.dtype)


def patch_merging(x, H, W, gamma, beta, weight, *, eps=1e-5,
                  matmul_dtype=None, target_rows=2048,
                  vmem_budget_bytes=32 << 20, vmem_limit_bytes=48 << 20):
    """PatchMerging forward.

    x: (B, H*W, C).  gamma/beta: (4C,) LayerNorm affine.  weight: (2C, 4C)
    (torch nn.Linear layout, bias-free).  Returns (B, ceil(H/2)*ceil(W/2), 2C).
    """
    B, L, C = x.shape
    assert L == H * W, "input feature has wrong size"
    Co = weight.shape[0]
    assert weight.shape == (Co, 4 * C)

    if matmul_dtype is None:
        mm_dtype = jnp.bfloat16 if weight.dtype == jnp.float32 else weight.dtype
    else:
        mm_dtype = jnp.dtype(matmul_dtype)

    xh = x.reshape(B, H, W, C)
    # TODO(synk): for odd H/W this jnp.pad materializes an extra HBM copy of
    # the input; an in-kernel mask / clamped index_map would avoid it.  Kept
    # as-is (matches the module's own F.pad and inputs are usually even).
    if (H % 2 == 1) or (W % 2 == 1):
        xh = jnp.pad(xh, ((0, 0), (0, H % 2), (0, W % 2), (0, 0)))
    Hp, Wp = xh.shape[1], xh.shape[2]
    Hc, Wc = Hp // 2, Wp // 2
    R = B * Hc

    # Free view: (B, Hp, Wp, C) -> (R=B*Hp/2, 2, Wp/2, 2C).
    #   [r, 0, w, :] = [x0 | x2] channels of merged pixel (r, w)
    #   [r, 1, w, :] = [x1 | x3] channels of merged pixel (r, w)
    v = xh.reshape(R, 2, Wc, 2 * C)

    # Fold the LayerNorm affine into the reduction, in the kernel's natural
    # channel order [x0, x2 | x1, x3].  Fold math in f32, single cast.
    idx_a = jnp.concatenate([jnp.arange(0, C), jnp.arange(2 * C, 3 * C)])
    idx_b = jnp.concatenate([jnp.arange(C, 2 * C), jnp.arange(3 * C, 4 * C)])
    wt = weight.astype(jnp.float32).T                          # (4C, Co)
    wt_g = wt * gamma.astype(jnp.float32)[:, None]             # gamma fold
    w_st = jnp.stack([wt_g[idx_a], wt_g[idx_b]]).astype(mm_dtype)  # (2,2C,Co)
    bias = (beta.astype(jnp.float32) @ wt).reshape(1, Co)      # beta fold, f32

    # --- Tile sizing: largest row tile whose double-buffered pipeline blocks
    # PLUS the in-kernel f32 working set fit the VMEM budget. ---
    in_isize = x.dtype.itemsize
    out_isize = x.dtype.itemsize
    mm_isize = jnp.dtype(mm_dtype).itemsize
    bytes_per_row = (
        2 * (2 * Wc * 2 * C) * in_isize       # input block  (x2 pipeline bufs)
        + 2 * (Wc * Co) * out_isize           # output block (x2 pipeline bufs)
        + 6 * (Wc * 2 * C) * 4                # f32 a/b/ca/cb working set
        + 2 * (Wc * 2 * C) * mm_isize         # mm-dtype casts of ca/cb
        + 2 * (Wc * Co) * 4                   # f32 matmul accumulators
    )
    param_bytes = 2 * (2 * (2 * C) * Co * mm_isize + Co * 4)   # worst case x2
    avail = max(vmem_budget_bytes - param_bytes, bytes_per_row)
    tr_tok = max(1, target_rows // max(Wc, 1))
    tr_mem = max(1, avail // bytes_per_row)
    tr = int(min(R, tr_tok, tr_mem))
    # Keep the 2-D output block (tr*Wc, Co) sublane-aligned unless it spans
    # the whole array.
    if tr < R:
        step = 8 // math.gcd(Wc, 8)
        tr = max(step, (tr // step) * step)
    if tr >= R:
        tr = R
    grid = (pl.cdiv(R, tr),)

    tokens = R * Wc
    cost = pl.CostEstimate(
        flops=2 * tokens * (4 * C) * Co,
        transcendentals=tokens,
        bytes_accessed=(tokens * 4 * C * in_isize + tokens * Co * out_isize
                        + 2 * (2 * C) * Co * mm_isize + Co * 4),
    )

    def call(single_buffer_params):
        if single_buffer_params:
            w_spec = pl.BlockSpec((2, 2 * C, Co), lambda i: (0, 0, 0),
                                  pipeline_mode=pl.Buffered(1))
            b_spec = pl.BlockSpec((1, Co), lambda i: (0, 0),
                                  pipeline_mode=pl.Buffered(1))
        else:
            w_spec = pl.BlockSpec((2, 2 * C, Co), lambda i: (0, 0, 0))
            b_spec = pl.BlockSpec((1, Co), lambda i: (0, 0))
        return pl.pallas_call(
            functools.partial(_patch_merge_kernel, eps=eps),
            out_shape=jax.ShapeDtypeStruct((R * Wc, Co), x.dtype),
            grid_spec=pltpu.PrefetchScalarGridSpec(
                num_scalar_prefetch=0,
                grid=grid,
                in_specs=[
                    pl.BlockSpec((tr, 2, Wc, 2 * C), lambda i: (i, 0, 0, 0)),
                    w_spec,
                    b_spec,
                ],
                out_specs=pl.BlockSpec((tr * Wc, Co), lambda i: (i, 0)),
            ),
            compiler_params=pltpu.CompilerParams(
                dimension_semantics=("parallel",),
                vmem_limit_bytes=int(vmem_limit_bytes),
            ),
            cost_estimate=cost,
        )(v, w_st, bias)

    if hasattr(pl, "Buffered"):
        try:
            out = call(True)
        except Exception:  # fallback if Buffered(1) is rejected by this build
            out = call(False)
    else:
        out = call(False)

    # TODO(synk): a fully lane-dense (R, Wc*Co) output layout would need an
    # in-kernel lane-split relayout; only worth it if a profile shows the
    # store hot (Co >= 192 on real Swin stages already fills >1 vreg of lanes).
    return out.reshape(B, Hc * Wc, Co)


def _reference(x, H, W, gamma, beta, weight, eps=1e-5):
    B, L, C = x.shape
    xh = x.astype(jnp.float32).reshape(B, H, W, C)
    if (H % 2 == 1) or (W % 2 == 1):
        xh = jnp.pad(xh, ((0, 0), (0, H % 2), (0, W % 2), (0, 0)))
    x0 = xh[:, 0::2, 0::2, :]
    x1 = xh[:, 1::2, 0::2, :]
    x2 = xh[:, 0::2, 1::2, :]
    x3 = xh[:, 1::2, 1::2, :]
    xc = jnp.concatenate([x0, x1, x2, x3], axis=-1).reshape(B, -1, 4 * C)
    mean = jnp.mean(xc, axis=-1, keepdims=True)
    var = jnp.mean((xc - mean) ** 2, axis=-1, keepdims=True)
    xn = (xc - mean) * jax.lax.rsqrt(var + eps)
    y = xn * gamma.astype(jnp.float32) + beta.astype(jnp.float32)
    return y @ weight.astype(jnp.float32).T


if __name__ == "__main__":
    key = jax.random.PRNGKey(0)
    k1, k2, k3, k4, k5 = jax.random.split(key, 5)

    B, C, H, W = 2, 16, 16, 16                      # dim=16 -> 4C=64, Co=2C=32
    x = jax.random.normal(k1, (B, H * W, C), dtype=jnp.float32)
    gamma = 1.0 + 0.1 * jax.random.normal(k2, (4 * C,), dtype=jnp.float32)
    beta = 0.1 * jax.random.normal(k3, (4 * C,), dtype=jnp.float32)
    weight = 0.05 * jax.random.normal(k4, (2 * C, 4 * C), dtype=jnp.float32)

    ref = _reference(x, H, W, gamma, beta, weight)

    # 1) Exact-precision path (f32 MXU operands): tight tolerance.
    out_f32 = jax.block_until_ready(
        patch_merging(x, H, W, gamma, beta, weight, matmul_dtype=jnp.float32))
    assert out_f32.shape == (B, (H // 2) * (W // 2), 2 * C), out_f32.shape
    assert jnp.allclose(out_f32, ref, atol=1e-4, rtol=1e-4), \
        float(jnp.max(jnp.abs(out_f32 - ref)))

    # 2) Default fast path (bf16 MXU operands, f32 accumulation).
    out_bf = jax.block_until_ready(patch_merging(x, H, W, gamma, beta, weight))
    assert jnp.allclose(out_bf, ref, atol=3e-2, rtol=3e-2), \
        float(jnp.max(jnp.abs(out_bf - ref)))

    # 3) Odd H/W (pad path) with bf16 activations.
    H2, W2 = 15, 17
    x2 = jax.random.normal(k5, (B, H2 * W2, C), dtype=jnp.bfloat16)
    out2 = jax.block_until_ready(patch_merging(x2, H2, W2, gamma, beta, weight))
    ref2 = _reference(x2, H2, W2, gamma, beta, weight)
    assert out2.shape == (B, ((H2 + 1) // 2) * ((W2 + 1) // 2), 2 * C), out2.shape
    assert jnp.allclose(out2.astype(jnp.float32), ref2, atol=6e-2, rtol=6e-2), \
        float(jnp.max(jnp.abs(out2.astype(jnp.float32) - ref2)))

    print("KERNEL_OK")
</pallas_src>

<mosaic_0001>
module attributes {stable_mosaic.version = 11 : i64} {
  func.func @_patch_merge_kernel(%arg0: i32, %arg1: memref<16x2x8x32xf32, #tpu.memory_space<vmem>>, %arg2: memref<2x32x32xf32, #tpu.memory_space<vmem>>, %arg3: memref<1x32xf32, #tpu.memory_space<vmem>>, %arg4: memref<128x32xf32, #tpu.memory_space<vmem>>) attributes {dimension_semantics = [#tpu.dimension_semantics<parallel>], iteration_bounds = array<i64: 1>, scalar_prefetch = 0 : i64, scratch_operands = 0 : i64, tpu.core_type = #tpu.core_type<tc>, window_params = [{transform_indices = @transform_0, window_bounds = array<i64: 16, 2, 8, 32>}, {pipeline_mode = #tpu.pipeline_mode<synchronous>, transform_indices = @transform_1, window_bounds = array<i64: 2, 32, 32>}, {pipeline_mode = #tpu.pipeline_mode<synchronous>, transform_indices = @transform_2, window_bounds = array<i64: 1, 32>}, {transform_indices = @transform_3, window_bounds = array<i64: 128, 32>}]} {
    %c0 = arith.constant 0 : index
    %c0_0 = arith.constant 0 : index
    %c0_1 = arith.constant 0 : index
    %c0_2 = arith.constant 0 : index
    %0 = vector.load %arg1[%c0, %c0_0, %c0_1, %c0_2] : memref<16x2x8x32xf32, #tpu.memory_space<vmem>>, vector<16x1x8x32xf32>
    %1 = vector.shape_cast %0 : vector<16x1x8x32xf32> to vector<16x8x32xf32>
    %c0_3 = arith.constant 0 : index
    %c1 = arith.constant 1 : index
    %c0_4 = arith.constant 0 : index
    %c0_5 = arith.constant 0 : index
    %2 = vector.load %arg1[%c0_3, %c1, %c0_4, %c0_5] : memref<16x2x8x32xf32, #tpu.memory_space<vmem>>, vector<16x1x8x32xf32>
    %3 = vector.shape_cast %2 : vector<16x1x8x32xf32> to vector<16x8x32xf32>
    %cst = arith.constant dense<0.000000e+00> : vector<16x8xf32>
    %4 = vector.multi_reduction <add>, %1, %cst [2] : vector<16x8x32xf32> to vector<16x8xf32>
    %5 = vector.shape_cast %4 : vector<16x8xf32> to vector<16x8x1xf32>
    %cst_6 = arith.constant dense<0.000000e+00> : vector<16x8xf32>
    %6 = vector.multi_reduction <add>, %3, %cst_6 [2] : vector<16x8x32xf32> to vector<16x8xf32>
    %7 = vector.shape_cast %6 : vector<16x8xf32> to vector<16x8x1xf32>
    %8 = arith.addf %5, %7 : vector<16x8x1xf32>
    %cst_7 = arith.constant 1.562500e-02 : f32
    %9 = vector.broadcast %cst_7 : f32 to vector<16x8x1xf32>
    %10 = arith.mulf %8, %9 : vector<16x8x1xf32>
    %11 = vector.broadcast %10 : vector<16x8x1xf32> to vector<16x8x32xf32>
    %12 = arith.subf %1, %11 : vector<16x8x32xf32>
    %13 = vector.broadcast %10 : vector<16x8x1xf32> to vector<16x8x32xf32>
    %14 = arith.subf %3, %13 : vector<16x8x32xf32>
    %15 = arith.mulf %12, %12 : vector<16x8x32xf32>
    %cst_8 = arith.constant dense<0.000000e+00> : vector<16x8xf32>
    %16 = vector.multi_reduction <add>, %15, %cst_8 [2] : vector<16x8x32xf32> to vector<16x8xf32>
    %17 = vector.shape_cast %16 : vector<16x8xf32> to vector<16x8x1xf32>
    %18 = arith.mulf %14, %14 : vector<16x8x32xf32>
    %cst_9 = arith.constant dense<0.000000e+00> : vector<16x8xf32>
    %19 = vector.multi_reduction <add>, %18, %cst_9 [2] : vector<16x8x32xf32> to vector<16x8xf32>
    %20 = vector.shape_cast %19 : vector<16x8xf32> to vector<16x8x1xf32>
    %21 = arith.addf %17, %20 : vector<16x8x1xf32>
    %cst_10 = arith.constant 1.562500e-02 : f32
    %22 = vector.broadcast %cst_10 : f32 to vector<16x8x1xf32>
    %23 = arith.mulf %21, %22 : vector<16x8x1xf32>
    %cst_11 = arith.constant 9.99999974E-6 : f32
    %24 = vector.broadcast %cst_11 : f32 to vector<16x8x1xf32>
    %25 = arith.addf %23, %24 : vector<16x8x1xf32>
    %26 = math.rsqrt %25 : vector<16x8x1xf32>
    %27 = vector.shape_cast %12 : vector<16x8x32xf32> to vector<128x32xf32>
    %28 = vector.shape_cast %14 : vector<16x8x32xf32> to vector<128x32xf32>
    %c0_12 = arith.constant 0 : index
    %c0_13 = arith.constant 0 : index
    %c0_14 = arith.constant 0 : index
    %29 = vector.load %arg2[%c0_12, %c0_13, %c0_14] : memref<2x32x32xf32, #tpu.memory_space<vmem>>, vector<1x32x32xf32>
    %30 = vector.shape_cast %29 : vector<1x32x32xf32> to vector<32x32xf32>
    %cst_15 = arith.constant dense<0.000000e+00> : vector<128x32xf32>
    %31 = tpu.matmul %27, %30, %cst_15 {dimension_numbers = #tpu.dot_dimension_numbers<[1], [0], [0], [1], [0, 0, 1, 1], [], []>} : vector<128x32xf32>, vector<32x32xf32>, vector<128x32xf32> -> vector<128x32xf32>
    %c1_16 = arith.constant 1 : index
    %c0_17 = arith.constant 0 : index
    %c0_18 = arith.constant 0 : index
    %32 = vector.load %arg2[%c1_16, %c0_17, %c0_18] : memref<2x32x32xf32, #tpu.memory_space<vmem>>, vector<1x32x32xf32>
    %33 = vector.shape_cast %32 : vector<1x32x32xf32> to vector<32x32xf32>
    %cst_19 = arith.constant dense<0.000000e+00> : vector<128x32xf32>
    %34 = tpu.matmul %28, %33, %cst_19 {dimension_numbers = #tpu.dot_dimension_numbers<[1], [0], [0], [1], [0, 0, 1, 1], [], []>} : vector<128x32xf32>, vector<32x32xf32>, vector<128x32xf32> -> vector<128x32xf32>
    %35 = arith.addf %31, %34 : vector<128x32xf32>
    %36 = vector.shape_cast %26 : vector<16x8x1xf32> to vector<128x1xf32>
    %37 = vector.broadcast %36 : vector<128x1xf32> to vector<128x32xf32>
    %38 = arith.mulf %35, %37 : vector<128x32xf32>
    %c0_20 = arith.constant 0 : index
    %c0_21 = arith.constant 0 : index
    %39 = vector.load %arg3[%c0_20, %c0_21] : memref<1x32xf32, #tpu.memory_space<vmem>>, vector<1x32xf32>
    %40 = vector.broadcast %39 : vector<1x32xf32> to vector<128x32xf32>
    %41 = arith.addf %38, %40 : vector<128x32xf32>
    %c0_22 = arith.constant 0 : index
    %c0_23 = arith.constant 0 : index
    %42 = vector.load %arg4[%c0_22, %c0_23] : memref<128x32xf32, #tpu.memory_space<vmem>>, vector<128x32xf32>
    tpu.vector_store %arg4[%c0_22, %c0_23], %41 {strides = array<i32>} : memref<128x32xf32, #tpu.memory_space<vmem>>, vector<128x32xf32>,
    return
  }
  func.func @transform_0(%arg0: i32) -> (i32, i32, i32, i32) {
    %c0_i32 = arith.constant 0 : i32
    %c0_i32_0 = arith.constant 0 : i32
    %c0_i32_1 = arith.constant 0 : i32
    %c0_i32_2 = arith.constant 0 : i32
    return %arg0, %c0_i32, %c0_i32_0, %c0_i32_1 : i32, i32, i32, i32
  }
  func.func @transform_1(%arg0: i32) -> (i32, i32, i32) {
    %c0_i32 = arith.constant 0 : i32
    %c0_i32_0 = arith.constant 0 : i32
    %c0_i32_1 = arith.constant 0 : i32
    %c0_i32_2 = arith.constant 0 : i32
    return %c0_i32, %c0_i32_0, %c0_i32_1 : i32, i32, i32
  }
  func.func @transform_2(%arg0: i32) -> (i32, i32) {
    %c0_i32 = arith.constant 0 : i32
    %c0_i32_0 = arith.constant 0 : i32
    %c0_i32_1 = arith.constant 0 : i32
    return %c0_i32, %c0_i32_0 : i32, i32
  }
  func.func @transform_3(%arg0: i32) -> (i32, i32) {
    %c0_i32 = arith.constant 0 : i32
    %c0_i32_0 = arith.constant 0 : i32
    return %arg0, %c0_i32 : i32, i32
  }
}

module attributes {stable_mosaic.version = 11 : i64} {
  func.func @_patch_merge_kernel(%arg0: i32, %arg1: memref<16x2x8x32xf32, #tpu.memory_space<vmem>>, %arg2: memref<2x32x32xf32, #tpu.memory_space<vmem>>, %arg3: memref<1x32xf32, #tpu.memory_space<vmem>>, %arg4: memref<128x32xf32, #tpu.memory_space<vmem>>) attributes {dimension_semantics = [#tpu.dimension_semantics<parallel>], iteration_bounds = array<i64: 1>, scalar_prefetch = 0 : i64, scratch_operands = 0 : i64, tpu.core_type = #tpu.core_type<tc>, window_params = [{transform_indices = @transform_0, window_bounds = array<i64: 16, 2, 8, 32>}, {pipeline_mode = #tpu.pipeline_mode<synchronous>, transform_indices = @transform_1, window_bounds = array<i64: 2, 32, 32>}, {pipeline_mode = #tpu.pipeline_mode<synchronous>, transform_indices = @transform_2, window_bounds = array<i64: 1, 32>}, {transform_indices = @transform_3, window_bounds = array<i64: 128, 32>}]} {
    %c0 = arith.constant 0 : index
    %c0_0 = arith.constant 0 : index
    %c0_1 = arith.constant 0 : index
    %c0_2 = arith.constant 0 : index
    %0 = vector.load %arg1[%c0, %c0_0, %c0_1, %c0_2] : memref<16x2x8x32xf32, #tpu.memory_space<vmem>>, vector<16x1x8x32xf32>
    %1 = vector.shape_cast %0 : vector<16x1x8x32xf32> to vector<16x8x32xf32>
    %c0_3 = arith.constant 0 : index
    %c1 = arith.constant 1 : index
    %c0_4 = arith.constant 0 : index
    %c0_5 = arith.constant 0 : index
    %2 = vector.load %arg1[%c0_3, %c1, %c0_4, %c0_5] : memref<16x2x8x32xf32, #tpu.memory_space<vmem>>, vector<16x1x8x32xf32>
    %3 = vector.shape_cast %2 : vector<16x1x8x32xf32> to vector<16x8x32xf32>
    %cst = arith.constant dense<0.000000e+00> : vector<16x8xf32>
    %4 = vector.multi_reduction <add>, %1, %cst [2] : vector<16x8x32xf32> to vector<16x8xf32>
    %5 = vector.shape_cast %4 : vector<16x8xf32> to vector<16x8x1xf32>
    %cst_6 = arith.constant dense<0.000000e+00> : vector<16x8xf32>
    %6 = vector.multi_reduction <add>, %3, %cst_6 [2] : vector<16x8x32xf32> to vector<16x8xf32>
    %7 = vector.shape_cast %6 : vector<16x8xf32> to vector<16x8x1xf32>
    %8 = arith.addf %5, %7 : vector<16x8x1xf32>
    %cst_7 = arith.constant 1.562500e-02 : f32
    %9 = vector.broadcast %cst_7 : f32 to vector<16x8x1xf32>
    %10 = arith.mulf %8, %9 : vector<16x8x1xf32>
    %11 = vector.broadcast %10 : vector<16x8x1xf32> to vector<16x8x32xf32>
    %12 = arith.subf %1, %11 : vector<16x8x32xf32>
    %13 = vector.broadcast %10 : vector<16x8x1xf32> to vector<16x8x32xf32>
    %14 = arith.subf %3, %13 : vector<16x8x32xf32>
    %15 = arith.mulf %12, %12 : vector<16x8x32xf32>
    %cst_8 = arith.constant dense<0.000000e+00> : vector<16x8xf32>
    %16 = vector.multi_reduction <add>, %15, %cst_8 [2] : vector<16x8x32xf32> to vector<16x8xf32>
    %17 = vector.shape_cast %16 : vector<16x8xf32> to vector<16x8x1xf32>
    %18 = arith.mulf %14, %14 : vector<16x8x32xf32>
    %cst_9 = arith.constant dense<0.000000e+00> : vector<16x8xf32>
    %19 = vector.multi_reduction <add>, %18, %cst_9 [2] : vector<16x8x32xf32> to vector<16x8xf32>
    %20 = vector.shape_cast %19 : vector<16x8xf32> to vector<16x8x1xf32>
    %21 = arith.addf %17, %20 : vector<16x8x1xf32>
    %cst_10 = arith.constant 1.562500e-02 : f32
    %22 = vector.broadcast %cst_10 : f32 to vector<16x8x1xf32>
    %23 = arith.mulf %21, %22 : vector<16x8x1xf32>
    %cst_11 = arith.constant 9.99999974E-6 : f32
    %24 = vector.broadcast %cst_11 : f32 to vector<16x8x1xf32>
    %25 = arith.addf %23, %24 : vector<16x8x1xf32>
    %26 = math.rsqrt %25 : vector<16x8x1xf32>
    %27 = vector.shape_cast %12 : vector<16x8x32xf32> to vector<128x32xf32>
    %28 = vector.shape_cast %14 : vector<16x8x32xf32> to vector<128x32xf32>
    %c0_12 = arith.constant 0 : index
    %c0_13 = arith.constant 0 : index
    %c0_14 = arith.constant 0 : index
    %29 = vector.load %arg2[%c0_12, %c0_13, %c0_14] : memref<2x32x32xf32, #tpu.memory_space<vmem>>, vector<1x32x32xf32>
    %30 = vector.shape_cast %29 : vector<1x32x32xf32> to vector<32x32xf32>
    %cst_15 = arith.constant dense<0.000000e+00> : vector<128x32xf32>
    %31 = tpu.matmul %27, %30, %cst_15 {dimension_numbers = #tpu.dot_dimension_numbers<[1], [0], [0], [1], [0, 0, 1, 1], [], []>} : vector<128x32xf32>, vector<32x32xf32>, vector<128x32xf32> -> vector<128x32xf32>
    %c1_16 = arith.constant 1 : index
    %c0_17 = arith.constant 0 : index
    %c0_18 = arith.constant 0 : index
    %32 = vector.load %arg2[%c1_16, %c0_17, %c0_18] : memref<2x32x32xf32, #tpu.memory_space<vmem>>, vector<1x32x32xf32>
    %33 = vector.shape_cast %32 : vector<1x32x32xf32> to vector<32x32xf32>
    %cst_19 = arith.constant dense<0.000000e+00> : vector<128x32xf32>
    %34 = tpu.matmul %28, %33, %cst_19 {dimension_numbers = #tpu.dot_dimension_numbers<[1], [0], [0], [1], [0, 0, 1, 1], [], []>} : vector<128x32xf32>, vector<32x32xf32>, vector<128x32xf32> -> vector<128x32xf32>
    %35 = arith.addf %31, %34 : vector<128x32xf32>
    %36 = vector.shape_cast %26 : vector<16x8x1xf32> to vector<128x1xf32>
    %37 = vector.broadcast %36 : vector<128x1xf32> to vector<128x32xf32>
    %38 = arith.mulf %35, %37 : vector<128x32xf32>
    %c0_20 = arith.constant 0 : index
    %c0_21 = arith.constant 0 : index
    %39 = vector.load %arg3[%c0_20, %c0_21] : memref<1x32xf32, #tpu.memory_space<vmem>>, vector<1x32xf32>
    %40 = vector.broadcast %39 : vector<1x32xf32> to vector<128x32xf32>
    %41 = arith.addf %38, %40 : vector<128x32xf32>
    %c0_22 = arith.constant 0 : index
    %c0_23 = arith.constant 0 : index
    %42 = vector.load %arg4[%c0_22, %c0_23] : memref<128x32xf32, #tpu.memory_space<vmem>>, vector<128x32xf32>
    tpu.vector_store %arg4[%c0_22, %c0_23], %41 {strides = array<i32>} : memref<128x32xf32, #tpu.memory_space<vmem>>, vector<128x32xf32>,
    return
  }
  func.func @transform_0(%arg0: i32) -> (i32, i32, i32, i32) {
    %c0_i32 = arith.constant 0 : i32
    %c0_i32_0 = arith.constant 0 : i32
    %c0_i32_1 = arith.constant 0 : i32
    %c0_i32_2 = arith.constant 0 : i32
    return %arg0, %c0_i32, %c0_i32_0, %c0_i32_1 : i32, i32, i32, i32
  }
  func.func @transform_1(%arg0: i32) -> (i32, i32, i32) {
    %c0_i32 = arith.constant 0 : i32
    %c0_i32_0 = arith.constant 0 : i32
    %c0_i32_1 = arith.constant 0 : i32
    %c0_i32_2 = arith.constant 0 : i32
    return %c0_i32, %c0_i32_0, %c0_i32_1 : i32, i32, i32
  }
  func.func @transform_2(%arg0: i32) -> (i32, i32) {
    %c0_i32 = arith.constant 0 : i32
    %c0_i32_0 = arith.constant 0 : i32
    %c0_i32_1 = arith.constant 0 : i32
    return %c0_i32, %c0_i32_0 : i32, i32
  }
  func.func @transform_3(%arg0: i32) -> (i32, i32) {
    %c0_i32 = arith.constant 0 : i32
    %c0_i32_0 = arith.constant 0 : i32
    return %arg0, %c0_i32 : i32, i32
  }
}

</mosaic_0001>

<bundles_post_ra>
// kernel: tpu_custom_call.1
= control target key start
LH: loop header
LB: loop body
LE: loop exit
PB: predicated region body
PF: predicated region fallthrough
CT: control target
= control target key end

     0   :  { %8 = vsyncpa [#allocation3], 0  ;;  %s1693_s0 = inlined_call_operand.hbm [shape: f32[16,2,8,32], index: 0, kind: input, shape index: {}]   ;;  %s1694_s1 = inlined_call_operand.hbm [shape: f32[2,32,32], index: 1, kind: input, shape index: {}]   ;;  %s1695_s2 = inlined_call_operand.vmem [shape: f32[1,32], index: 2, kind: input, shape index: {}]   ;;  %s1696_s3 = inlined_call_operand.vmem [shape: f32[128,32], index: 3, kind: output, shape index: {}]  }
   0x1   :  { %s14_s14 = sshll.u32 %s1693_s0, 4  ;;  %s15_s14 = int_to_ptr.hbm [resolvable:$true] %s14_s14 }
   0x2   :  { %9 = vsyncpa [#allocation5], 0  ;;  %s998_s15 = smov [#allocation2]   ;;  %s27_s19 = sshll.u32 %s1694_s1, 4  ;;  %s28_s19 = int_to_ptr.hbm [resolvable:$true] %s27_s19 }
   0x3   :  { %s16_s16 = sshll.u32 %s998_s15, 4  ;;  %s999_s20 = smov 128   ;;  %s17_s16 = int_to_ptr.vmem [resolvable:$true] %s16_s16 }
   0x4   :  { %s1000_s21 = smov 8   ;;  %s1001_s22 = smov [#allocation4]  }
   0x5   :  { %22 = dma.hbm_to_vmem [thread:$0]  %s15_s14, 4096, %s17_s16, [#allocation3], %s999_s20, %s999_s20, %s1000_s21  }
   0x6   :  { %s29_s23 = sshll.u32 %s1001_s22, 4  ;;  %s30_s23 = int_to_ptr.vmem [resolvable:$true] %s29_s23 }
   0x7   :  { %35 = dma.hbm_to_vmem [thread:$0]  %s28_s19, 1024, %s30_s23, [#allocation5], %s999_s20, %s999_s20, %s1000_s21  }
   0x8   :  { %994 = dma.done.wait [#allocation3], 4096  }
   0x9   :  { %995 = vsyncadd [#allocation3], 4294963200 }
   0xa   :  { %996 = dma.done.wait [#allocation5], 1024  }
   0xb   :  { %997 = vsyncadd [#allocation5], 4294966272  ;;  %vm79_vm0 = vcmask 261120   ;;  %v1028_v0 = vld [vmem:[#allocation2 + $0x90] sm:$0xff]  ;;  %v1030_v1 = vld [vmem:[#allocation2 + $0x80] sm:$0xff] }
   0xc   :  { %v1032_v2 = vld [vmem:[#allocation2] sm:$0xff]  ;;  %v107_v3 = vsel %vm79_vm0, %v1028_v0, 0.0  ;;  %v104_v4 = vsel %vm79_vm0, %v1030_v1, 0.0  ;;  %v1040_v6 = vld [vmem:[#allocation2 + $0x98] sm:$0xff]  ;;  %v1042_v7 = vld [vmem:[#allocation2 + $0x88] sm:$0xff] }
   0xd   :  { %v80_v5 = vsel %vm79_vm0, %v1032_v2, 0.0  ;;  %108 = vadd.xlane.f32.xlu2 %v107_v3  ;;  %105 = vadd.xlane.f32.xlu0 %v104_v4  ;;  %v1044_v8 = vld [vmem:[#allocation2 + $0x8] sm:$0xff]  ;;  %v155_v9 = vsel %vm79_vm0, %v1040_v6, 0.0  ;;  %v152_v10 = vsel %vm79_vm0, %v1042_v7, 0.0  ;;  %v1052_v12 = vld [vmem:[#allocation2 + $0xa0] sm:$0xff]  ;;  %v1054_v13 = vld [vmem:[#allocation2 + $0x10] sm:$0xff] }
   0xe   :  { %81 = vadd.xlane.f32.xlu1 %v80_v5  ;;  %v128_v11 = vsel %vm79_vm0, %v1044_v8, 0.0  ;;  %v1056_v14 = vld [vmem:[#allocation2 + $0x18] sm:$0xff]  ;;  %v110_v15 = vsel %vm79_vm0, %v1052_v12, 0.0  ;;  %v83_v16 = vsel %vm79_vm0, %v1054_v13, 0.0  ;;  %v1064_v18 = vld [vmem:[#allocation2 + $0x28] sm:$0xff]  ;;  %v1068_v20 = vld [vmem:[#allocation2 + $0x20] sm:$0xff] }
   0xf   :  { %v131_v17 = vsel %vm79_vm0, %v1056_v14, 0.0  ;;  %v1066_v19 = vld [vmem:[#allocation2 + $0xa8] sm:$0xff]  ;;  %v134_v21 = vsel %vm79_vm0, %v1064_v18, 0.0  ;;  %v86_v23 = vsel %vm79_vm0, %v1068_v20, 0.0  ;;  %v1076_v24 = vld [vmem:[#allocation2 + $0x30] sm:$0xff]  ;;  %v1080_v26 = vld [vmem:[#allocation2 + $0xb8] sm:$0xff] }
  0x10   :  { %v158_v22 = vsel %vm79_vm0, %v1066_v19, 0.0  ;;  %v1078_v25 = vld [vmem:[#allocation2 + $0xb0] sm:$0xff]  ;;  %v89_v27 = vsel %vm79_vm0, %v1076_v24, 0.0  ;;  %v161_v29 = vsel %vm79_vm0, %v1080_v26, 0.0  ;;  %v1088_v30 = vld [vmem:[#allocation2 + $0xc8] sm:$0xff]  ;;  %v1090_v31 = vld [vmem:[#allocation2 + $0x38] sm:$0xff] }
  0x11   :  { %v113_v28 = vsel %vm79_vm0, %v1078_v25, 0.0  ;;  %v1092_v32 = vld [vmem:[#allocation2 + $0xc0] sm:$0xff]  ;;  %v164_v33 = vsel %vm79_vm0, %v1088_v30, 0.0  ;;  %v137_v34 = vsel %vm79_vm0, %v1090_v31, 0.0  ;;  %v1100_v36 = vld [vmem:[#allocation2 + $0xd0] sm:$0xff]  ;;  %v1104_v38 = vld [vmem:[#allocation2 + $0x48] sm:$0xff] }
  0x12   :  { %v116_v35 = vsel %vm79_vm0, %v1092_v32, 0.0  ;;  %v1102_v37 = vld [vmem:[#allocation2 + $0x40] sm:$0xff]  ;;  %v119_v39 = vsel %vm79_vm0, %v1100_v36, 0.0  ;;  %v140_v41 = vsel %vm79_vm0, %v1104_v38, 0.0  ;;  %v1112_v42 = vld [vmem:[#allocation2 + $0x58] sm:$0xff]  ;;  %v1116_v44 = vld [vmem:[#allocation2 + $0x50] sm:$0xff] }
  0x13   :  { %v92_v40 = vsel %vm79_vm0, %v1102_v37, 0.0  ;;  %v1114_v43 = vld [vmem:[#allocation2 + $0xd8] sm:$0xff]  ;;  %v143_v45 = vsel %vm79_vm0, %v1112_v42, 0.0  ;;  %v95_v47 = vsel %vm79_vm0, %v1116_v44, 0.0  ;;  %v1124_v48 = vld [vmem:[#allocation2 + $0x60] sm:$0xff]  ;;  %v1128_v50 = vld [vmem:[#allocation2 + $0xe8] sm:$0xff] }
  0x14   :  { %v167_v46 = vsel %vm79_vm0, %v1114_v43, 0.0  ;;  %v1126_v49 = vld [vmem:[#allocation2 + $0xe0] sm:$0xff]  ;;  %v98_v51 = vsel %vm79_vm0, %v1124_v48, 0.0  ;;  %v170_v53 = vsel %vm79_vm0, %v1128_v50, 0.0  ;;  %v1136_v54 = vld [vmem:[#allocation2 + $0xf8] sm:$0xff]  ;;  %v1138_v55 = vld [vmem:[#allocation2 + $0x68] sm:$0xff] }
  0x15   :  { %156 = vadd.xlane.f32.xlu2 %v155_v9  ;;  %153 = vadd.xlane.f32.xlu0 %v152_v10  ;;  %v122_v52 = vsel %vm79_vm0, %v1126_v49, 0.0  ;;  %v1140_v56 = vld [vmem:[#allocation2 + $0xf0] sm:$0xff]  ;;  %v173_v57 = vsel %vm79_vm0, %v1136_v54, 0.0  ;;  %v146_v58 = vsel %vm79_vm0, %v1138_v55, 0.0  ;;  %v1150_v61 = vld [vmem:[#allocation2 + $0x78] sm:$0xff]  ;;  %v582_v10 = vld [vmem:[#allocation4 + $0x28] sm:$0xff] }
  0x16   :  { %129 = vadd.xlane.f32.xlu1 %v128_v11  ;;  %v125_v59 = vsel %vm79_vm0, %v1140_v56, 0.0  ;;  %v1148_v60 = vld [vmem:[#allocation2 + $0x70] sm:$0xff]  ;;  %v149_v63 = vsel %vm79_vm0, %v1150_v61, 0.0  ;;  %v584_v3 = vld [vmem:[#allocation4 + $0x38] sm:$0xff]  ;;  %v577_v11 = vld [vmem:[#allocation4 + $0x8] sm:$0xff] }
  0x17   :  { %v101_v62 = vsel %vm79_vm0, %v1148_v60, 0.0  ;;  %v579_v4 = vld [vmem:[#allocation4 + $0x18] sm:$0xff]  ;;  %645 = vmatpush.msra.mxu0 %v584_v3  ;;  %901 = vmatpush.msra.mxu2 %v584_v3  ;;  %v583_v5 = vld [vmem:[#allocation4 + $0x30] sm:$0xff] }
  0x18   :  { %758 = vmatpush.msra.mxu1 %v579_v4  ;;  %905 = vmatpush.msra.mxu3 %v579_v4  ;;  %v578_v9 = vld [vmem:[#allocation4 + $0x10] sm:$0xff] }
  0x19   :  { %646 = vmatpush.msra.mxu0 %v583_v5  ;;  %902 = vmatpush.msra.mxu2 %v583_v5 }
  0x1a   :  { %759 = vmatpush.msra.mxu1 %v578_v9  ;;  %906 = vmatpush.msra.mxu3 %v578_v9 }
  0x1b   :  { %647 = vmatpush.msra.mxu0 %v582_v10  ;;  %903 = vmatpush.msra.mxu2 %v582_v10 }
  0x1c   :  { %760 = vmatpush.msra.mxu1 %v577_v11  ;;  %907 = vmatpush.msra.mxu3 %v577_v11 }
  0x1d   :  { %111 = vadd.xlane.f32.xlu2 %v110_v15  ;;  %84 = vadd.xlane.f32.xlu0 %v83_v16  ;;  %v581_v15 = vld [vmem:[#allocation4 + $0x20] sm:$0xff] }
  0x1e   :  { %132 = vadd.xlane.f32.xlu1 %v131_v17  ;;  %v576_v16 = vld [vmem:[#allocation4] sm:$0xff]  ;;  %648 = vmatpush.msra.mxu0 %v581_v15 }
  0x1f   :  { %904 = vmatpush.msra.mxu2 %v581_v15  ;;  %761 = vmatpush.msra.mxu1 %v576_v16 }
  0x20   :  { %908 = vmatpush.msra.mxu3 %v576_v16 }
  0x25   :  { %135 = vadd.xlane.f32.xlu2 %v134_v21  ;;  %159 = vadd.xlane.f32.xlu0 %v158_v22 }
  0x26   :  { %87 = vadd.xlane.f32.xlu1 %v86_v23 }
  0x2d   :  { %90 = vadd.xlane.f32.xlu2 %v89_v27  ;;  %114 = vadd.xlane.f32.xlu0 %v113_v28 }
  0x2e   :  { %162 = vadd.xlane.f32.xlu1 %v161_v29 }
  0x35   :  { %165 = vadd.xlane.f32.xlu2 %v164_v33  ;;  %138 = vadd.xlane.f32.xlu0 %v137_v34 }
  0x36   :  { %117 = vadd.xlane.f32.xlu1 %v116_v35 }
  0x3d   :  { %120 = vadd.xlane.f32.xlu2 %v119_v39  ;;  %93 = vadd.xlane.f32.xlu0 %v92_v40 }
  0x3e   :  { %141 = vadd.xlane.f32.xlu1 %v140_v41 }
  0x45   :  { %144 = vadd.xlane.f32.xlu2 %v143_v45  ;;  %168 = vadd.xlane.f32.xlu0 %v167_v46 }
  0x46   :  { %96 = vadd.xlane.f32.xlu1 %v95_v47 }
  0x4d   :  { %99 = vadd.xlane.f32.xlu2 %v98_v51  ;;  %123 = vadd.xlane.f32.xlu0 %v122_v52 }
  0x4e   :  { %171 = vadd.xlane.f32.xlu1 %v170_v53 }
  0x55   :  { %174 = vadd.xlane.f32.xlu2 %v173_v57  ;;  %147 = vadd.xlane.f32.xlu0 %v146_v58 }
  0x56   :  { %126 = vadd.xlane.f32.xlu1 %v125_v59 }
  0x5d   :  { %102 = vadd.xlane.f32.xlu0 %v101_v62 }
  0x5e   :  { %150 = vadd.xlane.f32.xlu1 %v149_v63 }
  0x80   :  { %v109_v17 = vpop.xlane.xlu2 %108  ;;  %v106_v21 = vpop.xlane.xlu0 %105 }
  0x81   :  { %v82_v22 = vpop.xlane.xlu1 %81 }
  0x88   :  { %v157_v23 = vpop.xlane.xlu2 %156  ;;  %v154_v27 = vpop.xlane.xlu0 %153 }
  0x89   :  { %v184_v28 = vadd.f32 %v154_v27, %v106_v21  ;;  %v130_v29 = vpop.xlane.xlu1 %129  ;;  %v185_v34 = vadd.f32 %v157_v23, %v109_v17 }
  0x8a   :  { %v176_v33 = vadd.f32 %v130_v29, %v82_v22 }
  0x8b   :  { %v200_v35 = vmul.f32 0.015625, %v184_v28  ;;  %v201_v47 = vmul.f32 0.015625, %v185_v34 }
  0x8c   :  { %v192_v39 = vmul.f32 0.015625, %v176_v33 }
  0x8d   :  { %v1157_v40 = vsub.f32 %v1030_v1, %v200_v35  ;;  %v1160_v41 = vsub.f32 %v1042_v7, %v200_v35  ;;  %v1175_v53 = vsub.f32 %v1028_v0, %v201_v47  ;;  %v1178_v57 = vsub.f32 %v1040_v6, %v201_v47 }
  0x8e   :  { %v208_v45 = vsub.f32 %v1032_v2, %v192_v39  ;;  %v1164_v46 = vsub.f32 %v1044_v8, %v192_v39 }
  0x8f   :  { %877 = vmatmul.msk.f32.vlgmr.msra.gmra.mxu2 %vm79_vm0, %v1160_v41  ;;  %893 = vmatmul.msk.f32.vlgmr.msra.gmra.mxu3 %vm79_vm0, %v1157_v40 }
  0x90   :  { %869 = vmatmul.msk.f32.vlgmr.msra.gmra.mxu0 %vm79_vm0, %v1164_v46  ;;  %885 = vmatmul.msk.f32.vlgmr.msra.gmra.mxu1 %vm79_vm0, %v208_v45  ;;  %v112_v1 = vpop.xlane.xlu2 %111  ;;  %v85_v7 = vpop.xlane.xlu0 %84  ;;  %v240_v51 = vmul.f32 %v208_v45, %v208_v45 }
  0x91   :  { %v133_v52 = vpop.xlane.xlu1 %132 }
  0x92   :  { %v177_v2 = vadd.f32 %v133_v52, %v85_v7  ;;  %v256_v8 = vsel %vm79_vm0, %v240_v51, 0.0 }
  0x93   :  { %257 = vadd.xlane.f32.xlu2 %v256_v8 }
  0x94   :  { %v193_v58 = vmul.f32 0.015625, %v177_v2 }
  0x96   :  { %v209_v59 = vsub.f32 %v1054_v13, %v193_v58  ;;  %v1182_v62 = vsub.f32 %v1056_v14, %v193_v58 }
  0x97   :  { %878 = vmatmul.msk.f32.gmra.mxu2 %vm79_vm0, %v1178_v57  ;;  %894 = vmatmul.msk.f32.gmra.mxu3 %vm79_vm0, %v1175_v53 }
  0x98   :  { %870 = vmatmul.msk.f32.gmra.mxu0 %vm79_vm0, %v1182_v62  ;;  %886 = vmatmul.msk.f32.gmra.mxu1 %vm79_vm0, %v209_v59  ;;  %v136_v0 = vpop.xlane.xlu2 %135  ;;  %v160_v6 = vpop.xlane.xlu0 %159  ;;  %v241_v63 = vmul.f32 %v209_v59, %v209_v59 }
  0x99   :  { %v186_v3 = vadd.f32 %v160_v6, %v112_v1  ;;  %v88_v4 = vpop.xlane.xlu1 %87 }
  0x9a   :  { %v178_v13 = vadd.f32 %v136_v0, %v88_v4  ;;  %v259_v14 = vsel %vm79_vm0, %v241_v63, 0.0 }
  0x9b   :  { %v202_v5 = vmul.f32 0.015625, %v186_v3  ;;  %260 = vadd.xlane.f32.xlu0 %v259_v14 }
  0x9c   :  { %v194_v9 = vmul.f32 0.015625, %v178_v13 }
  0x9d   :  { %v1193_v10 = vsub.f32 %v1052_v12, %v202_v5  ;;  %v1196_v11 = vsub.f32 %v1066_v19, %v202_v5 }
  0x9e   :  { %v210_v15 = vsub.f32 %v1068_v20, %v194_v9  ;;  %v1200_v16 = vsub.f32 %v1064_v18, %v194_v9 }
  0x9f   :  { %879 = vmatmul.msk.f32.gmra.mxu2 %vm79_vm0, %v1196_v11  ;;  %895 = vmatmul.msk.f32.gmra.mxu3 %vm79_vm0, %v1193_v10 }
  0xa0   :  { %871 = vmatmul.msk.f32.gmra.mxu0 %vm79_vm0, %v1200_v16  ;;  %887 = vmatmul.msk.f32.gmra.mxu1 %vm79_vm0, %v210_v15  ;;  %v91_v12 = vpop.xlane.xlu2 %90  ;;  %v115_v17 = vpop.xlane.xlu0 %114  ;;  %v242_v19 = vmul.f32 %v210_v15, %v210_v15 }
  0xa1   :  { %v163_v21 = vpop.xlane.xlu1 %162 }
  0xa2   :  { %v187_v22 = vadd.f32 %v163_v21, %v115_v17  ;;  %v262_v20 = vsel %vm79_vm0, %v242_v19, 0.0 }
  0xa3   :  { %263 = vadd.xlane.f32.xlu1 %v262_v20 }
  0xa4   :  { %v203_v18 = vmul.f32 0.015625, %v187_v22  ;;  %v248_v22 = vmul.f32 %v1157_v40, %v1157_v40 }
  0xa6   :  { %v1211_v23 = vsub.f32 %v1078_v25, %v203_v18  ;;  %v1214_v27 = vsub.f32 %v1080_v26, %v203_v18 }
  0xa8   :  { %880 = vmatmul.msk.f32.gmra.mxu2 %vm79_vm0, %v1214_v27  ;;  %896 = vmatmul.msk.f32.gmra.mxu3 %vm79_vm0, %v1211_v23  ;;  %v166_v28 = vpop.xlane.xlu2 %165  ;;  %v139_v29 = vpop.xlane.xlu0 %138 }
  0xa9   :  { %v179_v33 = vadd.f32 %v139_v29, %v91_v12  ;;  %v118_v34 = vpop.xlane.xlu1 %117 }
  0xaa   :  { %v188_v35 = vadd.f32 %v166_v28, %v118_v34  ;;  %v280_v34 = vsel %vm79_vm0, %v248_v22, 0.0 }
  0xab   :  { %v195_v39 = vmul.f32 0.015625, %v179_v33 }
  0xac   :  { %v204_v45 = vmul.f32 0.015625, %v188_v35 }
  0xad   :  { %v211_v47 = vsub.f32 %v1076_v24, %v195_v39  ;;  %v1222_v25 = vsub.f32 %v1090_v31, %v195_v39 }
  0xae   :  { %v1225_v26 = vsub.f32 %v1092_v32, %v204_v45  ;;  %v1228_v1 = vsub.f32 %v1088_v30, %v204_v45 }
  0xaf   :  { %872 = vmatmul.msk.f32.gmra.mxu0 %vm79_vm0, %v1222_v25  ;;  %888 = vmatmul.msk.f32.gmra.mxu1 %vm79_vm0, %v211_v47  ;;  %v243_v7 = vmul.f32 %v211_v47, %v211_v47  ;;  %v251_v47 = vmul.f32 %v1211_v23, %v1211_v23 }
  0xb0   :  { %881 = vmatmul.msk.f32.gmra.mxu2 %vm79_vm0, %v1228_v1  ;;  %897 = vmatmul.msk.f32.gmra.mxu3 %vm79_vm0, %v1225_v26  ;;  %v121_v24 = vpop.xlane.xlu2 %120  ;;  %v94_v31 = vpop.xlane.xlu0 %93 }
  0xb1   :  { %v142_v51 = vpop.xlane.xlu1 %141  ;;  %v265_v32 = vsel %vm79_vm0, %v243_v7, 0.0 }
  0xb2   :  { %v180_v52 = vadd.f32 %v142_v51, %v94_v31  ;;  %266 = vadd.xlane.f32.xlu2 %v265_v32  ;;  %v249_v31 = vmul.f32 %v1175_v53, %v1175_v53  ;;  %v250_v53 = vmul.f32 %v1193_v10, %v1193_v10 }
  0xb4   :  { %v196_v30 = vmul.f32 0.015625, %v180_v52 }
  0xb6   :  { %v212_v2 = vsub.f32 %v1102_v37, %v196_v30  ;;  %v1240_v8 = vsub.f32 %v1104_v38, %v196_v30 }
  0xb8   :  { %873 = vmatmul.msk.f32.gmra.mxu0 %vm79_vm0, %v1240_v8  ;;  %889 = vmatmul.msk.f32.gmra.mxu1 %vm79_vm0, %v212_v2  ;;  %v145_v58 = vpop.xlane.xlu2 %144  ;;  %v169_v59 = vpop.xlane.xlu0 %168  ;;  %v244_v0 = vmul.f32 %v212_v2, %v212_v2  ;;  %v283_v2 = vsel %vm79_vm0, %v249_v31, 0.0 }
  0xb9   :  { %v189_v6 = vadd.f32 %v169_v59, %v121_v24  ;;  %v97_v63 = vpop.xlane.xlu1 %96  ;;  %v289_v24 = vsel %vm79_vm0, %v251_v47, 0.0 }
  0xba   :  { %v181_v3 = vadd.f32 %v145_v58, %v97_v63  ;;  %v268_v4 = vsel %vm79_vm0, %v244_v0, 0.0  ;;  %v286_v63 = vsel %vm79_vm0, %v250_v53, 0.0 }
  0xbb   :  { %v205_v13 = vmul.f32 0.015625, %v189_v6  ;;  %269 = vadd.xlane.f32.xlu0 %v268_v4  ;;  %v308_v4 = vmul.f32 %v1240_v8, %v1240_v8 }
  0xbc   :  { %v197_v14 = vmul.f32 0.015625, %v181_v3 }
  0xbd   :  { %v1247_v37 = vsub.f32 %v1100_v36, %v205_v13  ;;  %v1250_v38 = vsub.f32 %v1114_v43, %v205_v13  ;;  %v332_v10 = vsel %vm79_vm0, %v308_v4, 0.0 }
  0xbe   :  { %v213_v5 = vsub.f32 %v1116_v44, %v197_v14  ;;  %v1254_v9 = vsub.f32 %v1112_v42, %v197_v14  ;;  %v306_v14 = vmul.f32 %v1200_v16, %v1200_v16  ;;  %v307_v16 = vmul.f32 %v1222_v25, %v1222_v25 }
  0xbf   :  { %882 = vmatmul.msk.f32.gmra.mxu2 %vm79_vm0, %v1250_v38  ;;  %898 = vmatmul.msk.f32.gmra.mxu3 %vm79_vm0, %v1247_v37 }
  0xc0   :  { %874 = vmatmul.msk.f32.gmra.mxu0 %vm79_vm0, %v1254_v9  ;;  %890 = vmatmul.msk.f32.gmra.mxu1 %vm79_vm0, %v213_v5  ;;  %v100_v36 = vpop.xlane.xlu2 %99  ;;  %v124_v15 = vpop.xlane.xlu0 %123  ;;  %v245_v43 = vmul.f32 %v213_v5, %v213_v5  ;;  %v326_v8 = vsel %vm79_vm0, %v306_v14, 0.0 }
  0xc1   :  { %v172_v12 = vpop.xlane.xlu1 %171 }
  0xc2   :  { %v190_v17 = vadd.f32 %v172_v12, %v124_v15  ;;  %v271_v44 = vsel %vm79_vm0, %v245_v43, 0.0  ;;  %v309_v43 = vmul.f32 %v1254_v9, %v1254_v9  ;;  %v314_v12 = vmul.f32 %v1196_v11, %v1196_v11 }
  0xc3   :  { %272 = vadd.xlane.f32.xlu1 %v271_v44  ;;  %v329_v44 = vsel %vm79_vm0, %v307_v16, 0.0  ;;  %v317_v9 = vmul.f32 %v1250_v38, %v1250_v38 }
  0xc4   :  { %v206_v42 = vmul.f32 0.015625, %v190_v17  ;;  %v350_v17 = vsel %vm79_vm0, %v314_v12, 0.0 }
  0xc6   :  { %v222_v19 = vsub.f32 %v1126_v49, %v206_v42  ;;  %v1266_v21 = vsub.f32 %v1128_v50, %v206_v42  ;;  %v312_v42 = vmul.f32 %v1160_v41, %v1160_v41  ;;  %v313_v41 = vmul.f32 %v1178_v57, %v1178_v57 }
  0xc8   :  { %883 = vmatmul.msk.f32.gmra.mxu2 %vm79_vm0, %v1266_v21  ;;  %899 = vmatmul.msk.f32.gmra.mxu3 %vm79_vm0, %v222_v19  ;;  %v175_v20 = vpop.xlane.xlu2 %174  ;;  %v148_v18 = vpop.xlane.xlu0 %147  ;;  %v254_v52 = vmul.f32 %v222_v19, %v222_v19  ;;  %v344_v25 = vsel %vm79_vm0, %v312_v42, 0.0  ;;  %v359_v19 = vsel %vm79_vm0, %v317_v9, 0.0 }
  0xc9   :  { %v182_v28 = vadd.f32 %v148_v18, %v100_v36  ;;  %v127_v29 = vpop.xlane.xlu1 %126  ;;  %v304_v36 = vmul.f32 %v1164_v46, %v1164_v46  ;;  %v335_v46 = vsel %vm79_vm0, %v309_v43, 0.0  ;;  %v347_v18 = vsel %vm79_vm0, %v313_v41, 0.0 }
  0xca   :  { %v191_v33 = vadd.f32 %v175_v20, %v127_v29  ;;  %v298_v58 = vsel %vm79_vm0, %v254_v52, 0.0  ;;  %v315_v20 = vmul.f32 %v1214_v27, %v1214_v27  ;;  %v316_v29 = vmul.f32 %v1228_v1, %v1228_v1 }
  0xcb   :  { %v198_v35 = vmul.f32 0.015625, %v182_v28  ;;  %281 = vadd.xlane.f32.xlu1 %v280_v34  ;;  %v320_v15 = vsel %vm79_vm0, %v304_v36, 0.0  ;;  %v318_v28 = vmul.f32 %v1266_v21, %v1266_v21 }
  0xcc   :  { %v207_v49 = vmul.f32 0.015625, %v191_v33  ;;  %v353_v38 = vsel %vm79_vm0, %v315_v20, 0.0  ;;  %v356_v27 = vsel %vm79_vm0, %v316_v29, 0.0 }
  0xcd   :  { %v214_v50 = vsub.f32 %v1124_v48, %v198_v35  ;;  %v1276_v39 = vsub.f32 %v1138_v55, %v198_v35  ;;  %v362_v33 = vsel %vm79_vm0, %v318_v28, 0.0 }
  0xce   :  { %v223_v40 = vsub.f32 %v1140_v56, %v207_v49  ;;  %v1280_v45 = vsub.f32 %v1136_v54, %v207_v49 }
  0xcf   :  { %875 = vmatmul.msk.f32.gmra.mxu0 %vm79_vm0, %v1276_v39  ;;  %891 = vmatmul.msk.f32.gmra.mxu1 %vm79_vm0, %v214_v50  ;;  %v246_v7 = vmul.f32 %v214_v50, %v214_v50  ;;  %v310_v11 = vmul.f32 %v1276_v39, %v1276_v39 }
  0xd0   :  { %884 = vmatmul.msk.f32.gmra.mxu2 %vm79_vm0, %v1280_v45  ;;  %900 = vmatmul.msk.f32.gmra.mxu3 %vm79_vm0, %v223_v40  ;;  %v103_v48 = vpop.xlane.xlu0 %102  ;;  %v255_v3 = vmul.f32 %v223_v40, %v223_v40  ;;  %v319_v57 = vmul.f32 %v1280_v45, %v1280_v45 }
  0xd1   :  { %v151_v55 = vpop.xlane.xlu1 %150  ;;  %v274_v56 = vsel %vm79_vm0, %v246_v7, 0.0  ;;  %v338_v22 = vsel %vm79_vm0, %v310_v11, 0.0 }
  0xd2   :  { %v183_v54 = vadd.f32 %v151_v55, %v103_v48  ;;  %275 = vadd.xlane.f32.xlu2 %v274_v56  ;;  %v365_v34 = vsel %vm79_vm0, %v319_v57, 0.0 }
  0xd3   :  { %290 = vadd.xlane.f32.xlu1 %v289_v24 }
  0xd4   :  { %v199_v23 = vmul.f32 0.015625, %v183_v54 }
  0xd6   :  { %v215_v51 = vsub.f32 %v1148_v60, %v199_v23  ;;  %v231_v32 = vsub.f32 %v1150_v61, %v199_v23  ;;  %v252_v60 = vmul.f32 %v1225_v26, %v1225_v26  ;;  %v305_v61 = vmul.f32 %v1182_v62, %v1182_v62 }
  0xd7   :  { %v253_v26 = vmul.f32 %v1247_v37, %v1247_v37  ;;  %v301_v62 = vsel %vm79_vm0, %v255_v3, 0.0 }
  0xd8   :  { %876 = vmatmul.msk.f32.gmra.mxu0 %vm79_vm0, %v231_v32  ;;  %892 = vmatmul.msk.f32.gmra.mxu1 %vm79_vm0, %v215_v51  ;;  %v247_v30 = vmul.f32 %v215_v51, %v215_v51  ;;  %v292_v0 = vsel %vm79_vm0, %v252_v60, 0.0  ;;  %v323_v6 = vsel %vm79_vm0, %v305_v61, 0.0  ;;  %v311_v5 = vmul.f32 %v231_v32, %v231_v32 }
  0xd9   :  { %v295_v13 = vsel %vm79_vm0, %v253_v26, 0.0 }
  0xda   :  { %284 = vadd.xlane.f32.xlu2 %v283_v2  ;;  %v277_v59 = vsel %vm79_vm0, %v247_v30, 0.0  ;;  %v341_v37 = vsel %vm79_vm0, %v311_v5, 0.0 }
  0xdb   :  { %299 = vadd.xlane.f32.xlu1 %v298_v58  ;;  %278 = vadd.xlane.f32.xlu0 %v277_v59 }
  0xe2   :  { %293 = vadd.xlane.f32.xlu2 %v292_v0 }
  0xe3   :  { %324 = vadd.xlane.f32.xlu1 %v323_v6  ;;  %287 = vadd.xlane.f32.xlu0 %v286_v63 }
  0xea   :  { %302 = vadd.xlane.f32.xlu2 %v301_v62 }
  0xeb   :  { %333 = vadd.xlane.f32.xlu1 %v332_v10  ;;  %296 = vadd.xlane.f32.xlu0 %v295_v13 }
  0xf2   :  { %327 = vadd.xlane.f32.xlu2 %v326_v8 }
  0xf3   :  { %342 = vadd.xlane.f32.xlu1 %v341_v37  ;;  %321 = vadd.xlane.f32.xlu0 %v320_v15 }
  0xfa   :  { %336 = vadd.xlane.f32.xlu2 %v335_v46 }
  0xfb   :  { %351 = vadd.xlane.f32.xlu1 %v350_v17  ;;  %330 = vadd.xlane.f32.xlu0 %v329_v44 }
 0x102   :  { %345 = vadd.xlane.f32.xlu2 %v344_v25 }
 0x103   :  { %360 = vadd.xlane.f32.xlu1 %v359_v19  ;;  %339 = vadd.xlane.f32.xlu0 %v338_v22 }
 0x106   :  { %v258_v21 = vpop.xlane.xlu2 %257 }
 0x10a   :  { %354 = vadd.xlane.f32.xlu2 %v353_v38 }
 0x10b   :  { %348 = vadd.xlane.f32.xlu0 %v347_v18 }
 0x10d   :  { %v1357_v35 = vpop.f32.mrf.mxu0  ;;  %v1359_v50 = vpop.f32.mrf.mxu1 }
 0x10e   :  { %v261_v7 = vpop.xlane.xlu0 %260 }
 0x112   :  { %363 = vadd.xlane.f32.xlu2 %v362_v33  ;;  %v1395_v10 = vpop.f32.mrf.mxu2  ;;  %v1397_v13 = vpop.f32.mrf.mxu3 }
 0x113   :  { %357 = vadd.xlane.f32.xlu0 %v356_v27 }
 0x115   :  { %v653_v1 = vpop.f32.mrf.mxu0  ;;  %v766_v40 = vpop.f32.mrf.mxu1 }
 0x116   :  { %v264_v49 = vpop.xlane.xlu1 %263  ;;  %v767_v57 = vadd.f32 %v766_v40, %v653_v1  ;;  %v1428_v1 = vadd.f32 %v1359_v50, %v1357_v35 }
 0x11a   :  { %v1406_v22 = vpop.f32.mrf.mxu2  ;;  %v1408_v20 = vpop.f32.mrf.mxu3 }
 0x11b   :  { %366 = vadd.xlane.f32.xlu0 %v365_v34  ;;  %v1421_v34 = vld [vmem:[%s1695_s2] ss:$0 sm:$0xff] }
 0x11d   :  { %v1367_v55 = vpop.f32.mrf.mxu0  ;;  %v1369_v45 = vpop.f32.mrf.mxu1 }
 0x125   :  { %v1363_v47 = vpop.xlane.xlu2 %266 }
 0x12c   :  { %v1375_v23 = vpop.f32.mrf.mxu0  ;;  %v1377_v31 = vpop.f32.mrf.mxu1 }
 0x12e   :  { %v270_v54 = vpop.xlane.xlu0 %269 }
 0x135   :  { %v1383_v30 = vpop.f32.mrf.mxu0  ;;  %v1385_v2 = vpop.f32.mrf.mxu1 }
 0x136   :  { %v1361_v39 = vpop.xlane.xlu1 %272  ;;  %v776_v35 = vadd.f32 %v1385_v2, %v1383_v30 }
 0x13d   :  { %v1389_v6 = vpop.f32.mrf.mxu0  ;;  %v778_v4 = vpop.f32.mrf.mxu1 }
 0x13e   :  { %v1365_v48 = vpop.xlane.xlu1 %281 }
 0x145   :  { %v1371_v56 = vpop.xlane.xlu2 %275 }
 0x146   :  { %v1373_v24 = vpop.xlane.xlu1 %290 }
 0x14c   :  { %v1401_v8 = vpop.f32.mrf.mxu0  ;;  %v1404_v12 = vpop.f32.mrf.mxu1 }
 0x14d   :  { %v1379_v51 = vpop.xlane.xlu2 %284 }
 0x14e   :  { %v279_v32 = vpop.xlane.xlu0 %278  ;;  %v1381_v52 = vpop.xlane.xlu1 %299 }
 0x155   :  { %v1387_v58 = vpop.xlane.xlu2 %293 }
 0x156   :  { %v288_v59 = vpop.xlane.xlu0 %287  ;;  %v325_v60 = vpop.xlane.xlu1 %324 }
 0x157   :  { %v369_v61 = vadd.f32 %v325_v60, %v261_v7 }
 0x159   :  { %v385_v53 = vmul.f32 0.015625, %v369_v61 }
 0x15b   :  { %v401_v0 = vadd.f32 1e-05, %v385_v53 }
 0x15d   :  { %914 = vrsqrt.f32 %v401_v0  ;;  %v1391_v63 = vpop.xlane.xlu2 %302  ;;  %vm432_vm2 = vweird.f32 %v401_v0 }
 0x15e   :  { %v1393_v3 = vpop.xlane.xlu0 %296  ;;  %v334_v26 = vpop.xlane.xlu1 %333 }
 0x15f   :  { %v372_v62 = vadd.f32 %v334_v26, %v270_v54  ;;  %v1437_v26 = vadd.f32 %v1377_v31, %v1375_v23 }
 0x161   :  { %v388_v14 = vmul.f32 0.015625, %v372_v62  ;;  %v671_v62 = vpop.f32.mrf.mxu0 }
 0x163   :  { %v915_v5 = vpop.eup %914  ;;  %v1399_v36 = vadd.f32 1e-05, %v388_v14  ;;  %v784_v14 = vpop.f32.mrf.mxu1 }
 0x164   :  { %v427_v37 = vmul.f32 %v915_v5, %v401_v0  ;;  %vm433_vm1 = vweird.f32 %v915_v5  ;;  %v1433_v0 = vadd.f32 %v1369_v45, %v1367_v55  ;;  %v1445_v55 = vadd.f32 %v778_v4, %v1389_v6 }
 0x165   :  { %916 = vrsqrt.f32 %v1399_v36  ;;  %v328_v15 = vpop.xlane.xlu2 %327  ;;  %vm434_vm3 = vmor %vm432_vm2, %vm433_vm1  ;;  %vm462_vm5 = vweird.f32 %v1399_v36 }
 0x166   :  { %v322_v43 = vpop.xlane.xlu0 %321  ;;  %v428_v16 = vmul.f32 %v915_v5, %v427_v37  ;;  %v370_v46 = vadd.f32 %v328_v15, %v264_v49  ;;  %v343_v44 = vpop.xlane.xlu1 %342  ;;  %v1451_v15 = vadd.f32 %v784_v14, %v671_v62 }
 0x167   :  { %v368_v17 = vadd.f32 %v322_v43, %v258_v21  ;;  %v375_v42 = vadd.f32 %v343_v44, %v279_v32  ;;  %v1465_v43 = vpop.f32.mrf.mxu2 }
 0x168   :  { %v429_v9 = vmul.f32 0.5, %v428_v16  ;;  %v386_v11 = vmul.f32 0.015625, %v370_v46  ;;  %v1467_v16 = vpop.f32.mrf.mxu3 }
 0x169   :  { %v384_v25 = vmul.f32 0.015625, %v368_v17  ;;  %v391_v19 = vmul.f32 0.015625, %v375_v42 }
 0x16a   :  { %v430_v41 = vsub.f32 1.5, %v429_v9  ;;  %v1410_v38 = vadd.f32 1e-05, %v386_v11 }
 0x16b   :  { %v1412_v18 = vadd.f32 1e-05, %v384_v25  ;;  %v917_v28 = vpop.eup %916  ;;  %v1414_v29 = vadd.f32 1e-05, %v391_v19 }
 0x16c   :  { %v431_v33 = vmul.f32 %v915_v5, %v430_v41  ;;  %v457_v27 = vmul.f32 %v917_v28, %v1399_v36  ;;  %918 = vrsqrt.f32 %v1410_v38  ;;  %vm463_vm4 = vweird.f32 %v917_v28 }
 0x16d   :  { %920 = vrsqrt.f32 %v1412_v18  ;;  %v337_v49 = vpop.xlane.xlu2 %336  ;;  %vm464_vm6 = vmor %vm462_vm5, %vm463_vm4  ;;  %vm442_vm7 = vweird.f32 %v1410_v38  ;;  %vm422_vm8 = vweird.f32 %v1412_v18  ;;  %vm492_vm9 = vweird.f32 %v1414_v29 }
 0x16e   :  { %v331_v21 = vpop.xlane.xlu0 %330  ;;  %v435_v7 = vsel %vm434_vm3, %v915_v5, %v431_v33  ;;  %v458_v54 = vmul.f32 %v917_v28, %v457_v27  ;;  %922 = vrsqrt.f32 %v1414_v29  ;;  %v373_v32 = vadd.f32 %v337_v49, %v1361_v39  ;;  %v352_v60 = vpop.xlane.xlu1 %351 }
 0x16f   :  { %v812_v40 = vmul.f32 %v767_v57, %v435_v7  ;;  %v371_v61 = vadd.f32 %v331_v21, %v1363_v47  ;;  %v378_v53 = vadd.f32 %v352_v60, %v288_v59 }
 0x170   :  { %v459_v39 = vmul.f32 0.5, %v458_v54  ;;  %v389_v5 = vmul.f32 0.015625, %v373_v32 }
 0x171   :  { %v832_v50 = vadd.f32 %v1421_v34, %v812_v40  ;;  %v387_v37 = vmul.f32 0.015625, %v371_v61  ;;  %v394_v47 = vmul.f32 0.015625, %v378_v53 }
 0x172   :  { %v1442_v59 = vpop.eup %918  ;;  %v460_v45 = vsub.f32 1.5, %v459_v39  ;;  %v1447_v23 = vadd.f32 1e-05, %v389_v5 }
 0x173   :  { %v1449_v31 = vpop.eup %920  ;;  %848 = vst.msk [vmem:[%s1696_s3 + $0x8] sm:$0xff] %vm79_vm0, %v832_v50  ;;  %v437_v30 = vmul.f32 %v1442_v59, %v1410_v38  ;;  %v1459_v2 = vadd.f32 1e-05, %v387_v37  ;;  %v1461_v6 = vadd.f32 1e-05, %v394_v47  ;;  %vm443_vm10 = vweird.f32 %v1442_v59 }
 0x174   :  { %v1463_v4 = vpop.eup %922  ;;  %v461_v46 = vmul.f32 %v917_v28, %v460_v45  ;;  %v417_v17 = vmul.f32 %v1449_v31, %v1412_v18  ;;  %924 = vrsqrt.f32 %v1447_v23  ;;  %vm423_vm11 = vweird.f32 %v1449_v31  ;;  %vm444_vm13 = vmor %vm442_vm7, %vm443_vm10 }
 0x175   :  { %v438_v44 = vmul.f32 %v1442_v59, %v437_v30  ;;  %v487_v42 = vmul.f32 %v1463_v4, %v1414_v29  ;;  %v346_v9 = vpop.xlane.xlu2 %345  ;;  %926 = vrsqrt.f32 %v1459_v2  ;;  %vm493_vm12 = vweird.f32 %v1463_v4  ;;  %vm424_vm15 = vmor %vm422_vm8, %vm423_vm11 }
 0x176   :  { %v340_v11 = vpop.xlane.xlu0 %339  ;;  %v465_v25 = vsel %vm464_vm6, %v917_v28, %v461_v46  ;;  %v418_v36 = vmul.f32 %v1449_v31, %v417_v17  ;;  %928 = vrsqrt.f32 %v1461_v6  ;;  %v361_v27 = vpop.xlane.xlu1 %360  ;;  %v376_v49 = vadd.f32 %v346_v9, %v1365_v48  ;;  %vm494_vm1 = vmor %vm492_vm9, %vm493_vm12 }
 0x177   :  { %v815_v19 = vmul.f32 %v776_v35, %v465_v25  ;;  %v439_v41 = vmul.f32 0.5, %v438_v44  ;;  %v488_v33 = vmul.f32 %v1463_v4, %v487_v42  ;;  %v374_v28 = vadd.f32 %v340_v11, %v1371_v56  ;;  %v1531_v44 = vpop.f32.mrf.mxu2  ;;  %v1533_v42 = vpop.f32.mrf.mxu3 }
 0x178   :  { %v419_v57 = vmul.f32 0.5, %v418_v36  ;;  %v392_v40 = vmul.f32 0.015625, %v376_v49  ;;  %v381_v53 = vadd.f32 %v361_v27, %v1393_v3  ;;  %vm472_vm14 = vweird.f32 %v1447_v23 }
 0x179   :  { %v835_v21 = vadd.f32 %v1421_v34, %v815_v19  ;;  %v440_v7 = vsub.f32 1.5, %v439_v41  ;;  %v489_v54 = vmul.f32 0.5, %v488_v33  ;;  %v390_v61 = vmul.f32 0.015625, %v374_v28 }
 0x17a   :  { %v1489_v32 = vpop.eup %924  ;;  %v420_v60 = vsub.f32 1.5, %v419_v57  ;;  %v1508_v39 = vadd.f32 1e-05, %v392_v40  ;;  %vm452_vm3 = vweird.f32 %v1459_v2  ;;  %vm522_vm7 = vweird.f32 %v1461_v6 }
 0x17b   :  { %851 = vst.msk [vmem:[%s1696_s3 + $0x20] sm:$0xff] %vm79_vm0, %v835_v21  ;;  %v441_v48 = vmul.f32 %v1442_v59, %v440_v7  ;;  %v490_v56 = vsub.f32 1.5, %v489_v54  ;;  %v467_v62 = vmul.f32 %v1489_v32, %v1447_v23  ;;  %v1500_v14 = vpop.eup %926  ;;  %v1510_v5 = vadd.f32 1e-05, %v390_v61 }
 0x17c   :  { %v421_v3 = vmul.f32 %v1449_v31, %v420_v60  ;;  %v1512_v35 = vpop.eup %928  ;;  %v447_v47 = vmul.f32 %v1500_v14, %v1459_v2  ;;  %vm473_vm2 = vweird.f32 %v1489_v32  ;;  %930 = vrsqrt.f32 %v1508_v39 }
 0x17d   :  { %v445_v50 = vsel %vm444_vm13, %v1442_v59, %v441_v48  ;;  %v491_v38 = vmul.f32 %v1463_v4, %v490_v56  ;;  %v468_v37 = vmul.f32 %v1489_v32, %v467_v62  ;;  %v355_v45 = vpop.xlane.xlu2 %354  ;;  %v517_v18 = vmul.f32 %v1512_v35, %v1461_v6  ;;  %vm474_vm5 = vmor %vm472_vm14, %vm473_vm2 }
 0x17e   :  { %v349_v30 = vpop.xlane.xlu0 %348  ;;  %v813_v46 = vmul.f32 %v1433_v0, %v445_v50  ;;  %v425_v17 = vsel %vm424_vm15, %v1449_v31, %v421_v3  ;;  %v397_v59 = vmul.f32 0.015625, %v381_v53  ;;  %v448_v31 = vmul.f32 %v1500_v14, %v447_v47 }
 0x17f   :  { %v811_v9 = vmul.f32 %v1428_v1, %v425_v17  ;;  %v495_v11 = vsel %vm494_vm1, %v1463_v4, %v491_v38  ;;  %v469_v0 = vmul.f32 0.5, %v468_v37  ;;  %v518_v36 = vmul.f32 %v1512_v35, %v517_v18  ;;  %v1591_v38 = vpop.f32.mrf.mxu2 }
 0x180   :  { %v833_v25 = vadd.f32 %v1421_v34, %v813_v46  ;;  %v818_v29 = vmul.f32 %v1451_v15, %v495_v11  ;;  %v449_v33 = vmul.f32 0.5, %v448_v31  ;;  %932 = vrsqrt.f32 %v1510_v5 }
 0x181   :  { %v831_v19 = vadd.f32 %v1421_v34, %v811_v9  ;;  %v470_v41 = vsub.f32 1.5, %v469_v0  ;;  %v519_v15 = vmul.f32 0.5, %v518_v36  ;;  %vm453_vm4 = vweird.f32 %v1500_v14 }
 0x182   :  { %849 = vst.msk [vmem:[%s1696_s3 + $0x10] sm:$0xff] %vm79_vm0, %v833_v25  ;;  %v838_v1 = vadd.f32 %v1421_v34, %v818_v29  ;;  %v450_v27 = vsub.f32 1.5, %v449_v33  ;;  %v1557_v57 = vadd.f32 1e-05, %v397_v59  ;;  %vm523_vm6 = vweird.f32 %v1512_v35  ;;  %vm454_vm8 = vmor %vm452_vm3, %vm453_vm4 }
 0x183   :  { %847 = vst.msk [vmem:[%s1696_s3] sm:$0xff] %vm79_vm0, %v831_v19  ;;  %v471_v4 = vmul.f32 %v1489_v32, %v470_v41  ;;  %v520_v49 = vsub.f32 1.5, %v519_v15  ;;  %v379_v28 = vadd.f32 %v355_v45, %v1373_v24  ;;  %v377_v21 = vadd.f32 %v349_v30, %v1379_v51  ;;  %vm524_vm9 = vmor %vm522_vm7, %vm523_vm6 }
 0x184   :  { %854 = vst.msk [vmem:[%s1696_s3 + $0x38] sm:$0xff] %vm79_vm0, %v838_v1  ;;  %v451_v54 = vmul.f32 %v1500_v14, %v450_v27  ;;  %934 = vrsqrt.f32 %v1557_v57  ;;  %v794_v53 = vadd.f32 %v1467_v16, %v1465_v43  ;;  %v1593_v43 = vpop.f32.mrf.mxu3  ;;  %v788_v29 = vadd.f32 %v1397_v13, %v1395_v10 }
 0x185   :  { %v475_v7 = vsel %vm474_vm5, %v1489_v32, %v471_v4  ;;  %v364_v60 = vpop.xlane.xlu2 %363  ;;  %v521_v24 = vmul.f32 %v1512_v35, %v520_v49  ;;  %v395_v51 = vmul.f32 0.015625, %v379_v28  ;;  %v393_v61 = vmul.f32 0.015625, %v377_v21  ;;  %v931_v32 = vpop.eup %930 }
 0x186   :  { %v358_v40 = vpop.xlane.xlu0 %357  ;;  %v816_v23 = vmul.f32 %v1445_v55, %v475_v7  ;;  %v455_v6 = vsel %vm454_vm8, %v1500_v14, %v451_v54  ;;  %v382_v55 = vadd.f32 %v364_v60, %v1381_v52  ;;  %v933_v56 = vpop.eup %932  ;;  %v497_v50 = vmul.f32 %v931_v32, %v1508_v39 }
 0x187   :  { %v380_v48 = vadd.f32 %v358_v40, %v1387_v58  ;;  %v814_v62 = vmul.f32 %v1437_v26, %v455_v6  ;;  %v525_v3 = vsel %vm524_vm9, %v1512_v35, %v521_v24  ;;  %v477_v14 = vmul.f32 %v933_v56, %v1510_v5  ;;  %v689_v1 = vpop.f32.mrf.mxu2 }
 0x188   :  { %v836_v2 = vadd.f32 %v1421_v34, %v816_v23  ;;  %v821_v16 = vmul.f32 %v794_v53, %v525_v3  ;;  %v498_v58 = vmul.f32 %v931_v32, %v497_v50  ;;  %v1601_v26 = vadd.f32 1e-05, %v395_v51 }
 0x189   :  { %v834_v52 = vadd.f32 %v1421_v34, %v814_v62  ;;  %v1603_v35 = vadd.f32 1e-05, %v393_v61  ;;  %v478_v45 = vmul.f32 %v933_v56, %v477_v14  ;;  %v398_v30 = vmul.f32 0.015625, %v382_v55 }
 0x18a   :  { %852 = vst.msk [vmem:[%s1696_s3 + $0x28] sm:$0xff] %vm79_vm0, %v836_v2  ;;  %v935_v37 = vpop.eup %934  ;;  %v841_v47 = vadd.f32 %v1421_v34, %v821_v16  ;;  %v396_v46 = vmul.f32 0.015625, %v380_v48  ;;  %v499_v17 = vmul.f32 0.5, %v498_v58  ;;  %936 = vrsqrt.f32 %v1601_v26 }
 0x18b   :  { %850 = vst.msk [vmem:[%s1696_s3 + $0x18] sm:$0xff] %vm79_vm0, %v834_v52  ;;  %v547_v18 = vmul.f32 %v935_v37, %v1557_v57  ;;  %vm503_vm10 = vweird.f32 %v931_v32  ;;  %v479_v59 = vmul.f32 0.5, %v478_v45  ;;  %938 = vrsqrt.f32 %v1603_v35 }
 0x18c   :  { %857 = vst.msk [vmem:[%s1696_s3 + $0x50] sm:$0xff] %vm79_vm0, %v841_v47  ;;  %v500_v11 = vsub.f32 1.5, %v499_v17  ;;  %v1617_v31 = vadd.f32 1e-05, %v398_v30  ;;  %v1619_v25 = vadd.f32 1e-05, %v396_v46  ;;  %vm483_vm11 = vweird.f32 %v933_v56  ;;  %v802_v15 = vpop.f32.mrf.mxu3 }
 0x18d   :  { %v548_v0 = vmul.f32 %v935_v37, %v547_v18  ;;  %v480_v36 = vsub.f32 1.5, %v479_v59  ;;  %vm502_vm12 = vweird.f32 %v1508_v39  ;;  %vm482_vm14 = vweird.f32 %v1510_v5 }
 0x18e   :  { %v367_v9 = vpop.xlane.xlu0 %366  ;;  %v501_v41 = vmul.f32 %v931_v32, %v500_v11  ;;  %940 = vrsqrt.f32 %v1617_v31  ;;  %vm504_vm13 = vmor %vm502_vm12, %vm503_vm10  ;;  %vm553_vm1 = vweird.f32 %v935_v37  ;;  %vm552_vm2 = vweird.f32 %v1557_v57 }
 0x18f   :  { %v383_v19 = vadd.f32 %v367_v9, %v1391_v63  ;;  %v549_v33 = vmul.f32 0.5, %v548_v0  ;;  %v481_v4 = vmul.f32 %v933_v56, %v480_v36  ;;  %942 = vrsqrt.f32 %v1619_v25  ;;  %vm484_vm15 = vmor %vm482_vm14, %vm483_vm11  ;;  %v692_v14 = vpop.f32.mrf.mxu2 }
 0x190   :  { %v937_v13 = vpop.eup %936  ;;  %v782_v63 = vadd.f32 %v1404_v12, %v1401_v8  ;;  %v505_v27 = vsel %vm504_vm13, %v931_v32, %v501_v41  ;;  %v803_v40 = vadd.f32 %v802_v15, %v689_v1  ;;  %vm554_vm3 = vmor %vm552_vm2, %vm553_vm1  ;;  %vm532_vm6 = vweird.f32 %v1601_v26 }
 0x191   :  { %v399_v10 = vmul.f32 0.015625, %v383_v19  ;;  %v550_v39 = vsub.f32 1.5, %v549_v33  ;;  %v939_v49 = vpop.eup %938  ;;  %v819_v28 = vmul.f32 %v788_v29, %v505_v27  ;;  %v485_v21 = vsel %vm484_vm15, %v933_v56, %v481_v4 }
 0x192   :  { %v527_v7 = vmul.f32 %v937_v13, %v1601_v26  ;;  %v817_v54 = vmul.f32 %v782_v63, %v485_v21  ;;  %v507_v5 = vmul.f32 %v939_v49, %v1603_v35  ;;  %vm533_vm4 = vweird.f32 %v937_v13 }
 0x193   :  { %v551_v60 = vmul.f32 %v935_v37, %v550_v39  ;;  %v839_v23 = vadd.f32 %v1421_v34, %v819_v28  ;;  %v1636_v12 = vadd.f32 1e-05, %v399_v10  ;;  %vm513_vm5 = vweird.f32 %v939_v49  ;;  %vm534_vm7 = vmor %vm532_vm6, %vm533_vm4 }
 0x194   :  { %v528_v8 = vmul.f32 %v937_v13, %v527_v7  ;;  %v941_v24 = vpop.eup %940  ;;  %v837_v51 = vadd.f32 %v1421_v34, %v817_v54  ;;  %v508_v32 = vmul.f32 %v939_v49, %v507_v5  ;;  %v805_v52 = vpop.f32.mrf.mxu3  ;;  %v797_v47 = vadd.f32 %v1533_v42, %v1531_v44 }
 0x195   :  { %v555_v61 = vsel %vm554_vm3, %v935_v37, %v551_v60  ;;  %v943_v53 = vpop.eup %942  ;;  %855 = vst.msk [vmem:[%s1696_s3 + $0x40] sm:$0xff] %vm79_vm0, %v839_v23  ;;  %v557_v55 = vmul.f32 %v941_v24, %v1617_v31  ;;  %944 = vrsqrt.f32 %v1636_v12  ;;  %vm512_vm8 = vweird.f32 %v1603_v35 }
 0x196   :  { %v824_v57 = vmul.f32 %v803_v40, %v555_v61  ;;  %v529_v6 = vmul.f32 0.5, %v528_v8  ;;  %853 = vst.msk [vmem:[%s1696_s3 + $0x30] sm:$0xff] %vm79_vm0, %v837_v51  ;;  %v509_v48 = vmul.f32 0.5, %v508_v32  ;;  %v537_v56 = vmul.f32 %v943_v53, %v1619_v25  ;;  %vm514_vm9 = vmor %vm512_vm8, %vm513_vm5 }
 0x197   :  { %v558_v3 = vmul.f32 %v941_v24, %v557_v55  ;;  %v791_v46 = vadd.f32 %v1408_v20, %v1406_v22  ;;  %vm563_vm10 = vweird.f32 %v941_v24  ;;  %vm543_vm11 = vweird.f32 %v943_v53 }
 0x198   :  { %v844_v2 = vadd.f32 %v1421_v34, %v824_v57  ;;  %v530_v62 = vsub.f32 1.5, %v529_v6  ;;  %v510_v50 = vsub.f32 1.5, %v509_v48  ;;  %v538_v16 = vmul.f32 %v943_v53, %v537_v56 }
 0x199   :  { %v559_v37 = vmul.f32 0.5, %v558_v3  ;;  %vm562_vm12 = vweird.f32 %v1617_v31  ;;  %v806_v35 = vadd.f32 %v805_v52, %v692_v14  ;;  %vm542_vm14 = vweird.f32 %v1619_v25 }
 0x19a   :  { %860 = vst.msk [vmem:[%s1696_s3 + $0x68] sm:$0xff] %vm79_vm0, %v844_v2  ;;  %v531_v58 = vmul.f32 %v937_v13, %v530_v62  ;;  %v511_v45 = vmul.f32 %v939_v49, %v510_v50  ;;  %v539_v30 = vmul.f32 0.5, %v538_v16  ;;  %vm564_vm13 = vmor %vm562_vm12, %vm563_vm10  ;;  %v800_v20 = vadd.f32 %v1593_v43, %v1591_v38  ;;  %v695_v43 = vpop.f32.mrf.mxu2 }
 0x19b   :  { %v560_v18 = vsub.f32 1.5, %v559_v37  ;;  %v945_v59 = vpop.eup %944  ;;  %vm544_vm15 = vmor %vm542_vm14, %vm543_vm11  ;;  %vm572_vm2 = vweird.f32 %v1636_v12 }
 0x19c   :  { %v535_v17 = vsel %vm534_vm7, %v937_v13, %v531_v58  ;;  %v515_v26 = vsel %vm514_vm9, %v939_v49, %v511_v45  ;;  %v540_v11 = vsub.f32 1.5, %v539_v30  ;;  %v567_v42 = vmul.f32 %v945_v59, %v1636_v12  ;;  %v808_v15 = vpop.f32.mrf.mxu3 }
 0x19d   :  { %v822_v9 = vmul.f32 %v797_v47, %v535_v17  ;;  %v820_v0 = vmul.f32 %v791_v46, %v515_v26  ;;  %v561_v44 = vmul.f32 %v941_v24, %v560_v18  ;;  %vm573_vm1 = vweird.f32 %v945_v59 }
 0x19e   :  { %v541_v22 = vmul.f32 %v943_v53, %v540_v11  ;;  %v568_v41 = vmul.f32 %v945_v59, %v567_v42  ;;  %v809_v63 = vadd.f32 %v808_v15, %v695_v43  ;;  %vm574_vm3 = vmor %vm572_vm2, %vm573_vm1 }
 0x19f   :  { %v842_v29 = vadd.f32 %v1421_v34, %v822_v9  ;;  %v840_v36 = vadd.f32 %v1421_v34, %v820_v0  ;;  %v565_v19 = vsel %vm564_vm13, %v941_v24, %v561_v44 }
 0x1a0   :  { %v825_v31 = vmul.f32 %v806_v35, %v565_v19  ;;  %v545_v33 = vsel %vm544_vm15, %v943_v53, %v541_v22  ;;  %v569_v1 = vmul.f32 0.5, %v568_v41 }
 0x1a1   :  { %858 = vst.msk [vmem:[%s1696_s3 + $0x58] sm:$0xff] %vm79_vm0, %v842_v29  ;;  %v823_v25 = vmul.f32 %v800_v20, %v545_v33 }
 0x1a2   :  { %856 = vst.msk [vmem:[%s1696_s3 + $0x48] sm:$0xff] %vm79_vm0, %v840_v36  ;;  %v845_v38 = vadd.f32 %v1421_v34, %v825_v31  ;;  %v570_v10 = vsub.f32 1.5, %v569_v1 }
 0x1a3   :  { %v843_v4 = vadd.f32 %v1421_v34, %v823_v25 }
 0x1a4   :  { %861 = vst.msk [vmem:[%s1696_s3 + $0x70] sm:$0xff] %vm79_vm0, %v845_v38  ;;  %v571_v13 = vmul.f32 %v945_v59, %v570_v10 }
 0x1a5   :  { %859 = vst.msk [vmem:[%s1696_s3 + $0x60] sm:$0xff] %vm79_vm0, %v843_v4 }
 0x1a6   :  { %v575_v27 = vsel %vm574_vm3, %v945_v59, %v571_v13 }
 0x1a7   :  { %v826_v39 = vmul.f32 %v809_v63, %v575_v27 }
 0x1a9   :  { %v846_v49 = vadd.f32 %v1421_v34, %v826_v39 }
 0x1ab   :  { %862 = vst.msk [vmem:[%s1696_s3 + $0x78] sm:$0xff] %vm79_vm0, %v846_v49 }
 0x1ac   :  { %867 = vsyncpa [#allocation3], 1 }
 0x1ad   :  { %868 = vsyncpa [#allocation5], 1 }

// kernel: tpu_custom_call.1
= control target key start
LH: loop header
LB: loop body
LE: loop exit
PB: predicated region body
PF: predicated region fallthrough
CT: control target
= control target key end

     0   :  { %8 = vsyncpa [#allocation3], 0  ;;  %s1693_s0 = inlined_call_operand.hbm [shape: f32[16,2,8,32], index: 0, kind: input, shape index: {}]   ;;  %s1694_s1 = inlined_call_operand.hbm [shape: f32[2,32,32], index: 1, kind: input, shape index: {}]   ;;  %s1695_s2 = inlined_call_operand.vmem [shape: f32[1,32], index: 2, kind: input, shape index: {}]   ;;  %s1696_s3 = inlined_call_operand.vmem [shape: f32[128,32], index: 3, kind: output, shape index: {}]  }
   0x1   :  { %s14_s14 = sshll.u32 %s1693_s0, 4  ;;  %s15_s14 = int_to_ptr.hbm [resolvable:$true] %s14_s14 }
   0x2   :  { %9 = vsyncpa [#allocation5], 0  ;;  %s998_s15 = smov [#allocation2]   ;;  %s27_s19 = sshll.u32 %s1694_s1, 4  ;;  %s28_s19 = int_to_ptr.hbm [resolvable:$true] %s27_s19 }
   0x3   :  { %s16_s16 = sshll.u32 %s998_s15, 4  ;;  %s999_s20 = smov 128   ;;  %s17_s16 = int_to_ptr.vmem [resolvable:$true] %s16_s16 }
   0x4   :  { %s1000_s21 = smov 8   ;;  %s1001_s22 = smov [#allocation4]  }
   0x5   :  { %22 = dma.hbm_to_vmem [thread:$0]  %s15_s14, 4096, %s17_s16, [#allocation3], %s999_s20, %s999_s20, %s1000_s21  }
   0x6   :  { %s29_s23 = sshll.u32 %s1001_s22, 4  ;;  %s30_s23 = int_to_ptr.vmem [resolvable:$true] %s29_s23 }
   0x7   :  { %35 = dma.hbm_to_vmem [thread:$0]  %s28_s19, 1024, %s30_s23, [#allocation5], %s999_s20, %s999_s20, %s1000_s21  }
   0x8   :  { %994 = dma.done.wait [#allocation3], 4096  }
   0x9   :  { %995 = vsyncadd [#allocation3], 4294963200 }
   0xa   :  { %996 = dma.done.wait [#allocation5], 1024  }
   0xb   :  { %997 = vsyncadd [#allocation5], 4294966272  ;;  %vm79_vm0 = vcmask 261120   ;;  %v1028_v0 = vld [vmem:[#allocation2 + $0x90] sm:$0xff]  ;;  %v1030_v1 = vld [vmem:[#allocation2 + $0x80] sm:$0xff] }
   0xc   :  { %v1032_v2 = vld [vmem:[#allocation2] sm:$0xff]  ;;  %v107_v3 = vsel %vm79_vm0, %v1028_v0, 0.0  ;;  %v104_v4 = vsel %vm79_vm0, %v1030_v1, 0.0  ;;  %v1040_v6 = vld [vmem:[#allocation2 + $0x98] sm:$0xff]  ;;  %v1042_v7 = vld [vmem:[#allocation2 + $0x88] sm:$0xff] }
   0xd   :  { %v80_v5 = vsel %vm79_vm0, %v1032_v2, 0.0  ;;  %108 = vadd.xlane.f32.xlu2 %v107_v3  ;;  %105 = vadd.xlane.f32.xlu0 %v104_v4  ;;  %v1044_v8 = vld [vmem:[#allocation2 + $0x8] sm:$0xff]  ;;  %v155_v9 = vsel %vm79_vm0, %v1040_v6, 0.0  ;;  %v152_v10 = vsel %vm79_vm0, %v1042_v7, 0.0  ;;  %v1052_v12 = vld [vmem:[#allocation2 + $0xa0] sm:$0xff]  ;;  %v1054_v13 = vld [vmem:[#allocation2 + $0x10] sm:$0xff] }
   0xe   :  { %81 = vadd.xlane.f32.xlu1 %v80_v5  ;;  %v128_v11 = vsel %vm79_vm0, %v1044_v8, 0.0  ;;  %v1056_v14 = vld [vmem:[#allocation2 + $0x18] sm:$0xff]  ;;  %v110_v15 = vsel %vm79_vm0, %v1052_v12, 0.0  ;;  %v83_v16 = vsel %vm79_vm0, %v1054_v13, 0.0  ;;  %v1064_v18 = vld [vmem:[#allocation2 + $0x28] sm:$0xff]  ;;  %v1068_v20 = vld [vmem:[#allocation2 + $0x20] sm:$0xff] }
   0xf   :  { %v131_v17 = vsel %vm79_vm0, %v1056_v14, 0.0  ;;  %v1066_v19 = vld [vmem:[#allocation2 + $0xa8] sm:$0xff]  ;;  %v134_v21 = vsel %vm79_vm0, %v1064_v18, 0.0  ;;  %v86_v23 = vsel %vm79_vm0, %v1068_v20, 0.0  ;;  %v1076_v24 = vld [vmem:[#allocation2 + $0x30] sm:$0xff]  ;;  %v1080_v26 = vld [vmem:[#allocation2 + $0xb8] sm:$0xff] }
  0x10   :  { %v158_v22 = vsel %vm79_vm0, %v1066_v19, 0.0  ;;  %v1078_v25 = vld [vmem:[#allocation2 + $0xb0] sm:$0xff]  ;;  %v89_v27 = vsel %vm79_vm0, %v1076_v24, 0.0  ;;  %v161_v29 = vsel %vm79_vm0, %v1080_v26, 0.0  ;;  %v1088_v30 = vld [vmem:[#allocation2 + $0xc8] sm:$0xff]  ;;  %v1090_v31 = vld [vmem:[#allocation2 + $0x38] sm:$0xff] }
  0x11   :  { %v113_v28 = vsel %vm79_vm0, %v1078_v25, 0.0  ;;  %v1092_v32 = vld [vmem:[#allocation2 + $0xc0] sm:$0xff]  ;;  %v164_v33 = vsel %vm79_vm0, %v1088_v30, 0.0  ;;  %v137_v34 = vsel %vm79_vm0, %v1090_v31, 0.0  ;;  %v1100_v36 = vld [vmem:[#allocation2 + $0xd0] sm:$0xff]  ;;  %v1104_v38 = vld [vmem:[#allocation2 + $0x48] sm:$0xff] }
  0x12   :  { %v116_v35 = vsel %vm79_vm0, %v1092_v32, 0.0  ;;  %v1102_v37 = vld [vmem:[#allocation2 + $0x40] sm:$0xff]  ;;  %v119_v39 = vsel %vm79_vm0, %v1100_v36, 0.0  ;;  %v140_v41 = vsel %vm79_vm0, %v1104_v38, 0.0  ;;  %v1112_v42 = vld [vmem:[#allocation2 + $0x58] sm:$0xff]  ;;  %v1116_v44 = vld [vmem:[#allocation2 + $0x50] sm:$0xff] }
  0x13   :  { %v92_v40 = vsel %vm79_vm0, %v1102_v37, 0.0  ;;  %v1114_v43 = vld [vmem:[#allocation2 + $0xd8] sm:$0xff]  ;;  %v143_v45 = vsel %vm79_vm0, %v1112_v42, 0.0  ;;  %v95_v47 = vsel %vm79_vm0, %v1116_v44, 0.0  ;;  %v1124_v48 = vld [vmem:[#allocation2 + $0x60] sm:$0xff]  ;;  %v1128_v50 = vld [vmem:[#allocation2 + $0xe8] sm:$0xff] }
  0x14   :  { %v167_v46 = vsel %vm79_vm0, %v1114_v43, 0.0  ;;  %v1126_v49 = vld [vmem:[#allocation2 + $0xe0] sm:$0xff]  ;;  %v98_v51 = vsel %vm79_vm0, %v1124_v48, 0.0  ;;  %v170_v53 = vsel %vm79_vm0, %v1128_v50, 0.0  ;;  %v1136_v54 = vld [vmem:[#allocation2 + $0xf8] sm:$0xff]  ;;  %v1138_v55 = vld [vmem:[#allocation2 + $0x68] sm:$0xff] }
  0x15   :  { %156 = vadd.xlane.f32.xlu2 %v155_v9  ;;  %153 = vadd.xlane.f32.xlu0 %v152_v10  ;;  %v122_v52 = vsel %vm79_vm0, %v1126_v49, 0.0  ;;  %v1140_v56 = vld [vmem:[#allocation2 + $0xf0] sm:$0xff]  ;;  %v173_v57 = vsel %vm79_vm0, %v1136_v54, 0.0  ;;  %v146_v58 = vsel %vm79_vm0, %v1138_v55, 0.0  ;;  %v1150_v61 = vld [vmem:[#allocation2 + $0x78] sm:$0xff]  ;;  %v582_v10 = vld [vmem:[#allocation4 + $0x28] sm:$0xff] }
  0x16   :  { %129 = vadd.xlane.f32.xlu1 %v128_v11  ;;  %v125_v59 = vsel %vm79_vm0, %v1140_v56, 0.0  ;;  %v1148_v60 = vld [vmem:[#allocation2 + $0x70] sm:$0xff]  ;;  %v149_v63 = vsel %vm79_vm0, %v1150_v61, 0.0  ;;  %v584_v3 = vld [vmem:[#allocation4 + $0x38] sm:$0xff]  ;;  %v577_v11 = vld [vmem:[#allocation4 + $0x8] sm:$0xff] }
  0x17   :  { %v101_v62 = vsel %vm79_vm0, %v1148_v60, 0.0  ;;  %v579_v4 = vld [vmem:[#allocation4 + $0x18] sm:$0xff]  ;;  %645 = vmatpush.msra.mxu0 %v584_v3  ;;  %901 = vmatpush.msra.mxu2 %v584_v3  ;;  %v583_v5 = vld [vmem:[#allocation4 + $0x30] sm:$0xff] }
  0x18   :  { %758 = vmatpush.msra.mxu1 %v579_v4  ;;  %905 = vmatpush.msra.mxu3 %v579_v4  ;;  %v578_v9 = vld [vmem:[#allocation4 + $0x10] sm:$0xff] }
  0x19   :  { %646 = vmatpush.msra.mxu0 %v583_v5  ;;  %902 = vmatpush.msra.mxu2 %v583_v5 }
  0x1a   :  { %759 = vmatpush.msra.mxu1 %v578_v9  ;;  %906 = vmatpush.msra.mxu3 %v578_v9 }
  0x1b   :  { %647 = vmatpush.msra.mxu0 %v582_v10  ;;  %903 = vmatpush.msra.mxu2 %v582_v10 }
  0x1c   :  { %760 = vmatpush.msra.mxu1 %v577_v11  ;;  %907 = vmatpush.msra.mxu3 %v577_v11 }
  0x1d   :  { %111 = vadd.xlane.f32.xlu2 %v110_v15  ;;  %84 = vadd.xlane.f32.xlu0 %v83_v16  ;;  %v581_v15 = vld [vmem:[#allocation4 + $0x20] sm:$0xff] }
  0x1e   :  { %132 = vadd.xlane.f32.xlu1 %v131_v17  ;;  %v576_v16 = vld [vmem:[#allocation4] sm:$0xff]  ;;  %648 = vmatpush.msra.mxu0 %v581_v15 }
  0x1f   :  { %904 = vmatpush.msra.mxu2 %v581_v15  ;;  %761 = vmatpush.msra.mxu1 %v576_v16 }
  0x20   :  { %908 = vmatpush.msra.mxu3 %v576_v16 }
  0x25   :  { %135 = vadd.xlane.f32.xlu2 %v134_v21  ;;  %159 = vadd.xlane.f32.xlu0 %v158_v22 }
  0x26   :  { %87 = vadd.xlane.f32.xlu1 %v86_v23 }
  0x2d   :  { %90 = vadd.xlane.f32.xlu2 %v89_v27  ;;  %114 = vadd.xlane.f32.xlu0 %v113_v28 }
  0x2e   :  { %162 = vadd.xlane.f32.xlu1 %v161_v29 }
  0x35   :  { %165 = vadd.xlane.f32.xlu2 %v164_v33  ;;  %138 = vadd.xlane.f32.xlu0 %v137_v34 }
  0x36   :  { %117 = vadd.xlane.f32.xlu1 %v116_v35 }
  0x3d   :  { %120 = vadd.xlane.f32.xlu2 %v119_v39  ;;  %93 = vadd.xlane.f32.xlu0 %v92_v40 }
  0x3e   :  { %141 = vadd.xlane.f32.xlu1 %v140_v41 }
  0x45   :  { %144 = vadd.xlane.f32.xlu2 %v143_v45  ;;  %168 = vadd.xlane.f32.xlu0 %v167_v46 }
  0x46   :  { %96 = vadd.xlane.f32.xlu1 %v95_v47 }
  0x4d   :  { %99 = vadd.xlane.f32.xlu2 %v98_v51  ;;  %123 = vadd.xlane.f32.xlu0 %v122_v52 }
  0x4e   :  { %171 = vadd.xlane.f32.xlu1 %v170_v53 }
  0x55   :  { %174 = vadd.xlane.f32.xlu2 %v173_v57  ;;  %147 = vadd.xlane.f32.xlu0 %v146_v58 }
  0x56   :  { %126 = vadd.xlane.f32.xlu1 %v125_v59 }
  0x5d   :  { %102 = vadd.xlane.f32.xlu0 %v101_v62 }
  0x5e   :  { %150 = vadd.xlane.f32.xlu1 %v149_v63 }
  0x80   :  { %v109_v17 = vpop.xlane.xlu2 %108  ;;  %v106_v21 = vpop.xlane.xlu0 %105 }
  0x81   :  { %v82_v22 = vpop.xlane.xlu1 %81 }
  0x88   :  { %v157_v23 = vpop.xlane.xlu2 %156  ;;  %v154_v27 = vpop.xlane.xlu0 %153 }
  0x89   :  { %v184_v28 = vadd.f32 %v154_v27, %v106_v21  ;;  %v130_v29 = vpop.xlane.xlu1 %129  ;;  %v185_v34 = vadd.f32 %v157_v23, %v109_v17 }
  0x8a   :  { %v176_v33 = vadd.f32 %v130_v29, %v82_v22 }
  0x8b   :  { %v200_v35 = vmul.f32 0.015625, %v184_v28  ;;  %v201_v47 = vmul.f32 0.015625, %v185_v34 }
  0x8c   :  { %v192_v39 = vmul.f32 0.015625, %v176_v33 }
  0x8d   :  { %v1157_v40 = vsub.f32 %v1030_v1, %v200_v35  ;;  %v1160_v41 = vsub.f32 %v1042_v7, %v200_v35  ;;  %v1175_v53 = vsub.f32 %v1028_v0, %v201_v47  ;;  %v1178_v57 = vsub.f32 %v1040_v6, %v201_v47 }
  0x8e   :  { %v208_v45 = vsub.f32 %v1032_v2, %v192_v39  ;;  %v1164_v46 = vsub.f32 %v1044_v8, %v192_v39 }
  0x8f   :  { %877 = vmatmul.msk.f32.vlgmr.msra.gmra.mxu2 %vm79_vm0, %v1160_v41  ;;  %893 = vmatmul.msk.f32.vlgmr.msra.gmra.mxu3 %vm79_vm0, %v1157_v40 }
  0x90   :  { %869 = vmatmul.msk.f32.vlgmr.msra.gmra.mxu0 %vm79_vm0, %v1164_v46  ;;  %885 = vmatmul.msk.f32.vlgmr.msra.gmra.mxu1 %vm79_vm0, %v208_v45  ;;  %v112_v1 = vpop.xlane.xlu2 %111  ;;  %v85_v7 = vpop.xlane.xlu0 %84  ;;  %v240_v51 = vmul.f32 %v208_v45, %v208_v45 }
  0x91   :  { %v133_v52 = vpop.xlane.xlu1 %132 }
  0x92   :  { %v177_v2 = vadd.f32 %v133_v52, %v85_v7  ;;  %v256_v8 = vsel %vm79_vm0, %v240_v51, 0.0 }
  0x93   :  { %257 = vadd.xlane.f32.xlu2 %v256_v8 }
  0x94   :  { %v193_v58 = vmul.f32 0.015625, %v177_v2 }
  0x96   :  { %v209_v59 = vsub.f32 %v1054_v13, %v193_v58  ;;  %v1182_v62 = vsub.f32 %v1056_v14, %v193_v58 }
  0x97   :  { %878 = vmatmul.msk.f32.gmra.mxu2 %vm79_vm0, %v1178_v57  ;;  %894 = vmatmul.msk.f32.gmra.mxu3 %vm79_vm0, %v1175_v53 }
  0x98   :  { %870 = vmatmul.msk.f32.gmra.mxu0 %vm79_vm0, %v1182_v62  ;;  %886 = vmatmul.msk.f32.gmra.mxu1 %vm79_vm0, %v209_v59  ;;  %v136_v0 = vpop.xlane.xlu2 %135  ;;  %v160_v6 = vpop.xlane.xlu0 %159  ;;  %v241_v63 = vmul.f32 %v209_v59, %v209_v59 }
  0x99   :  { %v186_v3 = vadd.f32 %v160_v6, %v112_v1  ;;  %v88_v4 = vpop.xlane.xlu1 %87 }
  0x9a   :  { %v178_v13 = vadd.f32 %v136_v0, %v88_v4  ;;  %v259_v14 = vsel %vm79_vm0, %v241_v63, 0.0 }
  0x9b   :  { %v202_v5 = vmul.f32 0.015625, %v186_v3  ;;  %260 = vadd.xlane.f32.xlu0 %v259_v14 }
  0x9c   :  { %v194_v9 = vmul.f32 0.015625, %v178_v13 }
  0x9d   :  { %v1193_v10 = vsub.f32 %v1052_v12, %v202_v5  ;;  %v1196_v11 = vsub.f32 %v1066_v19, %v202_v5 }
  0x9e   :  { %v210_v15 = vsub.f32 %v1068_v20, %v194_v9  ;;  %v1200_v16 = vsub.f32 %v1064_v18, %v194_v9 }
  0x9f   :  { %879 = vmatmul.msk.f32.gmra.mxu2 %vm79_vm0, %v1196_v11  ;;  %895 = vmatmul.msk.f32.gmra.mxu3 %vm79_vm0, %v1193_v10 }
  0xa0   :  { %871 = vmatmul.msk.f32.gmra.mxu0 %vm79_vm0, %v1200_v16  ;;  %887 = vmatmul.msk.f32.gmra.mxu1 %vm79_vm0, %v210_v15  ;;  %v91_v12 = vpop.xlane.xlu2 %90  ;;  %v115_v17 = vpop.xlane.xlu0 %114  ;;  %v242_v19 = vmul.f32 %v210_v15, %v210_v15 }
  0xa1   :  { %v163_v21 = vpop.xlane.xlu1 %162 }
  0xa2   :  { %v187_v22 = vadd.f32 %v163_v21, %v115_v17  ;;  %v262_v20 = vsel %vm79_vm0, %v242_v19, 0.0 }
  0xa3   :  { %263 = vadd.xlane.f32.xlu1 %v262_v20 }
  0xa4   :  { %v203_v18 = vmul.f32 0.015625, %v187_v22  ;;  %v248_v22 = vmul.f32 %v1157_v40, %v1157_v40 }
  0xa6   :  { %v1211_v23 = vsub.f32 %v1078_v25, %v203_v18  ;;  %v1214_v27 = vsub.f32 %v1080_v26, %v203_v18 }
  0xa8   :  { %880 = vmatmul.msk.f32.gmra.mxu2 %vm79_vm0, %v1214_v27  ;;  %896 = vmatmul.msk.f32.gmra.mxu3 %vm79_vm0, %v1211_v23  ;;  %v166_v28 = vpop.xlane.xlu2 %165  ;;  %v139_v29 = vpop.xlane.xlu0 %138 }
  0xa9   :  { %v179_v33 = vadd.f32 %v139_v29, %v91_v12  ;;  %v118_v34 = vpop.xlane.xlu1 %117 }
  0xaa   :  { %v188_v35 = vadd.f32 %v166_v28, %v118_v34  ;;  %v280_v34 = vsel %vm79_vm0, %v248_v22, 0.0 }
  0xab   :  { %v195_v39 = vmul.f32 0.015625, %v179_v33 }
  0xac   :  { %v204_v45 = vmul.f32 0.015625, %v188_v35 }
  0xad   :  { %v211_v47 = vsub.f32 %v1076_v24, %v195_v39  ;;  %v1222_v25 = vsub.f32 %v1090_v31, %v195_v39 }
  0xae   :  { %v1225_v26 = vsub.f32 %v1092_v32, %v204_v45  ;;  %v1228_v1 = vsub.f32 %v1088_v30, %v204_v45 }
  0xaf   :  { %872 = vmatmul.msk.f32.gmra.mxu0 %vm79_vm0, %v1222_v25  ;;  %888 = vmatmul.msk.f32.gmra.mxu1 %vm79_vm0, %v211_v47  ;;  %v243_v7 = vmul.f32 %v211_v47, %v211_v47  ;;  %v251_v47 = vmul.f32 %v1211_v23, %v1211_v23 }
  0xb0   :  { %881 = vmatmul.msk.f32.gmra.mxu2 %vm79_vm0, %v1228_v1  ;;  %897 = vmatmul.msk.f32.gmra.mxu3 %vm79_vm0, %v1225_v26  ;;  %v121_v24 = vpop.xlane.xlu2 %120  ;;  %v94_v31 = vpop.xlane.xlu0 %93 }
  0xb1   :  { %v142_v51 = vpop.xlane.xlu1 %141  ;;  %v265_v32 = vsel %vm79_vm0, %v243_v7, 0.0 }
  0xb2   :  { %v180_v52 = vadd.f32 %v142_v51, %v94_v31  ;;  %266 = vadd.xlane.f32.xlu2 %v265_v32  ;;  %v249_v31 = vmul.f32 %v1175_v53, %v1175_v53  ;;  %v250_v53 = vmul.f32 %v1193_v10, %v1193_v10 }
  0xb4   :  { %v196_v30 = vmul.f32 0.015625, %v180_v52 }
  0xb6   :  { %v212_v2 = vsub.f32 %v1102_v37, %v196_v30  ;;  %v1240_v8 = vsub.f32 %v1104_v38, %v196_v30 }
  0xb8   :  { %873 = vmatmul.msk.f32.gmra.mxu0 %vm79_vm0, %v1240_v8  ;;  %889 = vmatmul.msk.f32.gmra.mxu1 %vm79_vm0, %v212_v2  ;;  %v145_v58 = vpop.xlane.xlu2 %144  ;;  %v169_v59 = vpop.xlane.xlu0 %168  ;;  %v244_v0 = vmul.f32 %v212_v2, %v212_v2  ;;  %v283_v2 = vsel %vm79_vm0, %v249_v31, 0.0 }
  0xb9   :  { %v189_v6 = vadd.f32 %v169_v59, %v121_v24  ;;  %v97_v63 = vpop.xlane.xlu1 %96  ;;  %v289_v24 = vsel %vm79_vm0, %v251_v47, 0.0 }
  0xba   :  { %v181_v3 = vadd.f32 %v145_v58, %v97_v63  ;;  %v268_v4 = vsel %vm79_vm0, %v244_v0, 0.0  ;;  %v286_v63 = vsel %vm79_vm0, %v250_v53, 0.0 }
  0xbb   :  { %v205_v13 = vmul.f32 0.015625, %v189_v6  ;;  %269 = vadd.xlane.f32.xlu0 %v268_v4  ;;  %v308_v4 = vmul.f32 %v1240_v8, %v1240_v8 }
  0xbc   :  { %v197_v14 = vmul.f32 0.015625, %v181_v3 }
  0xbd   :  { %v1247_v37 = vsub.f32 %v1100_v36, %v205_v13  ;;  %v1250_v38 = vsub.f32 %v1114_v43, %v205_v13  ;;  %v332_v10 = vsel %vm79_vm0, %v308_v4, 0.0 }
  0xbe   :  { %v213_v5 = vsub.f32 %v1116_v44, %v197_v14  ;;  %v1254_v9 = vsub.f32 %v1112_v42, %v197_v14  ;;  %v306_v14 = vmul.f32 %v1200_v16, %v1200_v16  ;;  %v307_v16 = vmul.f32 %v1222_v25, %v1222_v25 }
  0xbf   :  { %882 = vmatmul.msk.f32.gmra.mxu2 %vm79_vm0, %v1250_v38  ;;  %898 = vmatmul.msk.f32.gmra.mxu3 %vm79_vm0, %v1247_v37 }
  0xc0   :  { %874 = vmatmul.msk.f32.gmra.mxu0 %vm79_vm0, %v1254_v9  ;;  %890 = vmatmul.msk.f32.gmra.mxu1 %vm79_vm0, %v213_v5  ;;  %v100_v36 = vpop.xlane.xlu2 %99  ;;  %v124_v15 = vpop.xlane.xlu0 %123  ;;  %v245_v43 = vmul.f32 %v213_v5, %v213_v5  ;;  %v326_v8 = vsel %vm79_vm0, %v306_v14, 0.0 }
  0xc1   :  { %v172_v12 = vpop.xlane.xlu1 %171 }
  0xc2   :  { %v190_v17 = vadd.f32 %v172_v12, %v124_v15  ;;  %v271_v44 = vsel %vm79_vm0, %v245_v43, 0.0  ;;  %v309_v43 = vmul.f32 %v1254_v9, %v1254_v9  ;;  %v314_v12 = vmul.f32 %v1196_v11, %v1196_v11 }
  0xc3   :  { %272 = vadd.xlane.f32.xlu1 %v271_v44  ;;  %v329_v44 = vsel %vm79_vm0, %v307_v16, 0.0  ;;  %v317_v9 = vmul.f32 %v1250_v38, %v1250_v38 }
  0xc4   :  { %v206_v42 = vmul.f32 0.015625, %v190_v17  ;;  %v350_v17 = vsel %vm79_vm0, %v314_v12, 0.0 }
  0xc6   :  { %v222_v19 = vsub.f32 %v1126_v49, %v206_v42  ;;  %v1266_v21 = vsub.f32 %v1128_v50, %v206_v42  ;;  %v312_v42 = vmul.f32 %v1160_v41, %v1160_v41  ;;  %v313_v41 = vmul.f32 %v1178_v57, %v1178_v57 }
  0xc8   :  { %883 = vmatmul.msk.f32.gmra.mxu2 %vm79_vm0, %v1266_v21  ;;  %899 = vmatmul.msk.f32.gmra.mxu3 %vm79_vm0, %v222_v19  ;;  %v175_v20 = vpop.xlane.xlu2 %174  ;;  %v148_v18 = vpop.xlane.xlu0 %147  ;;  %v254_v52 = vmul.f32 %v222_v19, %v222_v19  ;;  %v344_v25 = vsel %vm79_vm0, %v312_v42, 0.0  ;;  %v359_v19 = vsel %vm79_vm0, %v317_v9, 0.0 }
  0xc9   :  { %v182_v28 = vadd.f32 %v148_v18, %v100_v36  ;;  %v127_v29 = vpop.xlane.xlu1 %126  ;;  %v304_v36 = vmul.f32 %v1164_v46, %v1164_v46  ;;  %v335_v46 = vsel %vm79_vm0, %v309_v43, 0.0  ;;  %v347_v18 = vsel %vm79_vm0, %v313_v41, 0.0 }
  0xca   :  { %v191_v33 = vadd.f32 %v175_v20, %v127_v29  ;;  %v298_v58 = vsel %vm79_vm0, %v254_v52, 0.0  ;;  %v315_v20 = vmul.f32 %v1214_v27, %v1214_v27  ;;  %v316_v29 = vmul.f32 %v1228_v1, %v1228_v1 }
  0xcb   :  { %v198_v35 = vmul.f32 0.015625, %v182_v28  ;;  %281 = vadd.xlane.f32.xlu1 %v280_v34  ;;  %v320_v15 = vsel %vm79_vm0, %v304_v36, 0.0  ;;  %v318_v28 = vmul.f32 %v1266_v21, %v1266_v21 }
  0xcc   :  { %v207_v49 = vmul.f32 0.015625, %v191_v33  ;;  %v353_v38 = vsel %vm79_vm0, %v315_v20, 0.0  ;;  %v356_v27 = vsel %vm79_vm0, %v316_v29, 0.0 }
  0xcd   :  { %v214_v50 = vsub.f32 %v1124_v48, %v198_v35  ;;  %v1276_v39 = vsub.f32 %v1138_v55, %v198_v35  ;;  %v362_v33 = vsel %vm79_vm0, %v318_v28, 0.0 }
  0xce   :  { %v223_v40 = vsub.f32 %v1140_v56, %v207_v49  ;;  %v1280_v45 = vsub.f32 %v1136_v54, %v207_v49 }
  0xcf   :  { %875 = vmatmul.msk.f32.gmra.mxu0 %vm79_vm0, %v1276_v39  ;;  %891 = vmatmul.msk.f32.gmra.mxu1 %vm79_vm0, %v214_v50  ;;  %v246_v7 = vmul.f32 %v214_v50, %v214_v50  ;;  %v310_v11 = vmul.f32 %v1276_v39, %v1276_v39 }
  0xd0   :  { %884 = vmatmul.msk.f32.gmra.mxu2 %vm79_vm0, %v1280_v45  ;;  %900 = vmatmul.msk.f32.gmra.mxu3 %vm79_vm0, %v223_v40  ;;  %v103_v48 = vpop.xlane.xlu0 %102  ;;  %v255_v3 = vmul.f32 %v223_v40, %v223_v40  ;;  %v319_v57 = vmul.f32 %v1280_v45, %v1280_v45 }
  0xd1   :  { %v151_v55 = vpop.xlane.xlu1 %150  ;;  %v274_v56 = vsel %vm79_vm0, %v246_v7, 0.0  ;;  %v338_v22 = vsel %vm79_vm0, %v310_v11, 0.0 }
  0xd2   :  { %v183_v54 = vadd.f32 %v151_v55, %v103_v48  ;;  %275 = vadd.xlane.f32.xlu2 %v274_v56  ;;  %v365_v34 = vsel %vm79_vm0, %v319_v57, 0.0 }
  0xd3   :  { %290 = vadd.xlane.f32.xlu1 %v289_v24 }
  0xd4   :  { %v199_v23 = vmul.f32 0.015625, %v183_v54 }
  0xd6   :  { %v215_v51 = vsub.f32 %v1148_v60, %v199_v23  ;;  %v231_v32 = vsub.f32 %v1150_v61, %v199_v23  ;;  %v252_v60 = vmul.f32 %v1225_v26, %v1225_v26  ;;  %v305_v61 = vmul.f32 %v1182_v62, %v1182_v62 }
  0xd7   :  { %v253_v26 = vmul.f32 %v1247_v37, %v1247_v37  ;;  %v301_v62 = vsel %vm79_vm0, %v255_v3, 0.0 }
  0xd8   :  { %876 = vmatmul.msk.f32.gmra.mxu0 %vm79_vm0, %v231_v32  ;;  %892 = vmatmul.msk.f32.gmra.mxu1 %vm79_vm0, %v215_v51  ;;  %v247_v30 = vmul.f32 %v215_v51, %v215_v51  ;;  %v292_v0 = vsel %vm79_vm0, %v252_v60, 0.0  ;;  %v323_v6 = vsel %vm79_vm0, %v305_v61, 0.0  ;;  %v311_v5 = vmul.f32 %v231_v32, %v231_v32 }
  0xd9   :  { %v295_v13 = vsel %vm79_vm0, %v253_v26, 0.0 }
  0xda   :  { %284 = vadd.xlane.f32.xlu2 %v283_v2  ;;  %v277_v59 = vsel %vm79_vm0, %v247_v30, 0.0  ;;  %v341_v37 = vsel %vm79_vm0, %v311_v5, 0.0 }
  0xdb   :  { %299 = vadd.xlane.f32.xlu1 %v298_v58  ;;  %278 = vadd.xlane.f32.xlu0 %v277_v59 }
  0xe2   :  { %293 = vadd.xlane.f32.xlu2 %v292_v0 }
  0xe3   :  { %324 = vadd.xlane.f32.xlu1 %v323_v6  ;;  %287 = vadd.xlane.f32.xlu0 %v286_v63 }
  0xea   :  { %302 = vadd.xlane.f32.xlu2 %v301_v62 }
  0xeb   :  { %333 = vadd.xlane.f32.xlu1 %v332_v10  ;;  %296 = vadd.xlane.f32.xlu0 %v295_v13 }
  0xf2   :  { %327 = vadd.xlane.f32.xlu2 %v326_v8 }
  0xf3   :  { %342 = vadd.xlane.f32.xlu1 %v341_v37  ;;  %321 = vadd.xlane.f32.xlu0 %v320_v15 }
  0xfa   :  { %336 = vadd.xlane.f32.xlu2 %v335_v46 }
  0xfb   :  { %351 = vadd.xlane.f32.xlu1 %v350_v17  ;;  %330 = vadd.xlane.f32.xlu0 %v329_v44 }
 0x102   :  { %345 = vadd.xlane.f32.xlu2 %v344_v25 }
 0x103   :  { %360 = vadd.xlane.f32.xlu1 %v359_v19  ;;  %339 = vadd.xlane.f32.xlu0 %v338_v22 }
 0x106   :  { %v258_v21 = vpop.xlane.xlu2 %257 }
 0x10a   :  { %354 = vadd.xlane.f32.xlu2 %v353_v38 }
 0x10b   :  { %348 = vadd.xlane.f32.xlu0 %v347_v18 }
 0x10d   :  { %v1357_v35 = vpop.f32.mrf.mxu0  ;;  %v1359_v50 = vpop.f32.mrf.mxu1 }
 0x10e   :  { %v261_v7 = vpop.xlane.xlu0 %260 }
 0x112   :  { %363 = vadd.xlane.f32.xlu2 %v362_v33  ;;  %v1395_v10 = vpop.f32.mrf.mxu2  ;;  %v1397_v13 = vpop.f32.mrf.mxu3 }
 0x113   :  { %357 = vadd.xlane.f32.xlu0 %v356_v27 }
 0x115   :  { %v653_v1 = vpop.f32.mrf.mxu0  ;;  %v766_v40 = vpop.f32.mrf.mxu1 }
 0x116   :  { %v264_v49 = vpop.xlane.xlu1 %263  ;;  %v767_v57 = vadd.f32 %v766_v40, %v653_v1  ;;  %v1428_v1 = vadd.f32 %v1359_v50, %v1357_v35 }
 0x11a   :  { %v1406_v22 = vpop.f32.mrf.mxu2  ;;  %v1408_v20 = vpop.f32.mrf.mxu3 }
 0x11b   :  { %366 = vadd.xlane.f32.xlu0 %v365_v34  ;;  %v1421_v34 = vld [vmem:[%s1695_s2] ss:$0 sm:$0xff] }
 0x11d   :  { %v1367_v55 = vpop.f32.mrf.mxu0  ;;  %v1369_v45 = vpop.f32.mrf.mxu1 }
 0x125   :  { %v1363_v47 = vpop.xlane.xlu2 %266 }
 0x12c   :  { %v1375_v23 = vpop.f32.mrf.mxu0  ;;  %v1377_v31 = vpop.f32.mrf.mxu1 }
 0x12e   :  { %v270_v54 = vpop.xlane.xlu0 %269 }
 0x135   :  { %v1383_v30 = vpop.f32.mrf.mxu0  ;;  %v1385_v2 = vpop.f32.mrf.mxu1 }
 0x136   :  { %v1361_v39 = vpop.xlane.xlu1 %272  ;;  %v776_v35 = vadd.f32 %v1385_v2, %v1383_v30 }
 0x13d   :  { %v1389_v6 = vpop.f32.mrf.mxu0  ;;  %v778_v4 = vpop.f32.mrf.mxu1 }
 0x13e   :  { %v1365_v48 = vpop.xlane.xlu1 %281 }
 0x145   :  { %v1371_v56 = vpop.xlane.xlu2 %275 }
 0x146   :  { %v1373_v24 = vpop.xlane.xlu1 %290 }
 0x14c   :  { %v1401_v8 = vpop.f32.mrf.mxu0  ;;  %v1404_v12 = vpop.f32.mrf.mxu1 }
 0x14d   :  { %v1379_v51 = vpop.xlane.xlu2 %284 }
 0x14e   :  { %v279_v32 = vpop.xlane.xlu0 %278  ;;  %v1381_v52 = vpop.xlane.xlu1 %299 }
 0x155   :  { %v1387_v58 = vpop.xlane.xlu2 %293 }
 0x156   :  { %v288_v59 = vpop.xlane.xlu0 %287  ;;  %v325_v60 = vpop.xlane.xlu1 %324 }
 0x157   :  { %v369_v61 = vadd.f32 %v325_v60, %v261_v7 }
 0x159   :  { %v385_v53 = vmul.f32 0.015625, %v369_v61 }
 0x15b   :  { %v401_v0 = vadd.f32 1e-05, %v385_v53 }
 0x15d   :  { %914 = vrsqrt.f32 %v401_v0  ;;  %v1391_v63 = vpop.xlane.xlu2 %302  ;;  %vm432_vm2 = vweird.f32 %v401_v0 }
 0x15e   :  { %v1393_v3 = vpop.xlane.xlu0 %296  ;;  %v334_v26 = vpop.xlane.xlu1 %333 }
 0x15f   :  { %v372_v62 = vadd.f32 %v334_v26, %v270_v54  ;;  %v1437_v26 = vadd.f32 %v1377_v31, %v1375_v23 }
 0x161   :  { %v388_v14 = vmul.f32 0.015625, %v372_v62  ;;  %v671_v62 = vpop.f32.mrf.mxu0 }
 0x163   :  { %v915_v5 = vpop.eup %914  ;;  %v1399_v36 = vadd.f32 1e-05, %v388_v14  ;;  %v784_v14 = vpop.f32.mrf.mxu1 }
 0x164   :  { %v427_v37 = vmul.f32 %v915_v5, %v401_v0  ;;  %vm433_vm1 = vweird.f32 %v915_v5  ;;  %v1433_v0 = vadd.f32 %v1369_v45, %v1367_v55  ;;  %v1445_v55 = vadd.f32 %v778_v4, %v1389_v6 }
 0x165   :  { %916 = vrsqrt.f32 %v1399_v36  ;;  %v328_v15 = vpop.xlane.xlu2 %327  ;;  %vm434_vm3 = vmor %vm432_vm2, %vm433_vm1  ;;  %vm462_vm5 = vweird.f32 %v1399_v36 }
 0x166   :  { %v322_v43 = vpop.xlane.xlu0 %321  ;;  %v428_v16 = vmul.f32 %v915_v5, %v427_v37  ;;  %v370_v46 = vadd.f32 %v328_v15, %v264_v49  ;;  %v343_v44 = vpop.xlane.xlu1 %342  ;;  %v1451_v15 = vadd.f32 %v784_v14, %v671_v62 }
 0x167   :  { %v368_v17 = vadd.f32 %v322_v43, %v258_v21  ;;  %v375_v42 = vadd.f32 %v343_v44, %v279_v32  ;;  %v1465_v43 = vpop.f32.mrf.mxu2 }
 0x168   :  { %v429_v9 = vmul.f32 0.5, %v428_v16  ;;  %v386_v11 = vmul.f32 0.015625, %v370_v46  ;;  %v1467_v16 = vpop.f32.mrf.mxu3 }
 0x169   :  { %v384_v25 = vmul.f32 0.015625, %v368_v17  ;;  %v391_v19 = vmul.f32 0.015625, %v375_v42 }
 0x16a   :  { %v430_v41 = vsub.f32 1.5, %v429_v9  ;;  %v1410_v38 = vadd.f32 1e-05, %v386_v11 }
 0x16b   :  { %v1412_v18 = vadd.f32 1e-05, %v384_v25  ;;  %v917_v28 = vpop.eup %916  ;;  %v1414_v29 = vadd.f32 1e-05, %v391_v19 }
 0x16c   :  { %v431_v33 = vmul.f32 %v915_v5, %v430_v41  ;;  %v457_v27 = vmul.f32 %v917_v28, %v1399_v36  ;;  %918 = vrsqrt.f32 %v1410_v38  ;;  %vm463_vm4 = vweird.f32 %v917_v28 }
 0x16d   :  { %920 = vrsqrt.f32 %v1412_v18  ;;  %v337_v49 = vpop.xlane.xlu2 %336  ;;  %vm464_vm6 = vmor %vm462_vm5, %vm463_vm4  ;;  %vm442_vm7 = vweird.f32 %v1410_v38  ;;  %vm422_vm8 = vweird.f32 %v1412_v18  ;;  %vm492_vm9 = vweird.f32 %v1414_v29 }
 0x16e   :  { %v331_v21 = vpop.xlane.xlu0 %330  ;;  %v435_v7 = vsel %vm434_vm3, %v915_v5, %v431_v33  ;;  %v458_v54 = vmul.f32 %v917_v28, %v457_v27  ;;  %922 = vrsqrt.f32 %v1414_v29  ;;  %v373_v32 = vadd.f32 %v337_v49, %v1361_v39  ;;  %v352_v60 = vpop.xlane.xlu1 %351 }
 0x16f   :  { %v812_v40 = vmul.f32 %v767_v57, %v435_v7  ;;  %v371_v61 = vadd.f32 %v331_v21, %v1363_v47  ;;  %v378_v53 = vadd.f32 %v352_v60, %v288_v59 }
 0x170   :  { %v459_v39 = vmul.f32 0.5, %v458_v54  ;;  %v389_v5 = vmul.f32 0.015625, %v373_v32 }
 0x171   :  { %v832_v50 = vadd.f32 %v1421_v34, %v812_v40  ;;  %v387_v37 = vmul.f32 0.015625, %v371_v61  ;;  %v394_v47 = vmul.f32 0.015625, %v378_v53 }
 0x172   :  { %v1442_v59 = vpop.eup %918  ;;  %v460_v45 = vsub.f32 1.5, %v459_v39  ;;  %v1447_v23 = vadd.f32 1e-05, %v389_v5 }
 0x173   :  { %v1449_v31 = vpop.eup %920  ;;  %848 = vst.msk [vmem:[%s1696_s3 + $0x8] sm:$0xff] %vm79_vm0, %v832_v50  ;;  %v437_v30 = vmul.f32 %v1442_v59, %v1410_v38  ;;  %v1459_v2 = vadd.f32 1e-05, %v387_v37  ;;  %v1461_v6 = vadd.f32 1e-05, %v394_v47  ;;  %vm443_vm10 = vweird.f32 %v1442_v59 }
 0x174   :  { %v1463_v4 = vpop.eup %922  ;;  %v461_v46 = vmul.f32 %v917_v28, %v460_v45  ;;  %v417_v17 = vmul.f32 %v1449_v31, %v1412_v18  ;;  %924 = vrsqrt.f32 %v1447_v23  ;;  %vm423_vm11 = vweird.f32 %v1449_v31  ;;  %vm444_vm13 = vmor %vm442_vm7, %vm443_vm10 }
 0x175   :  { %v438_v44 = vmul.f32 %v1442_v59, %v437_v30  ;;  %v487_v42 = vmul.f32 %v1463_v4, %v1414_v29  ;;  %v346_v9 = vpop.xlane.xlu2 %345  ;;  %926 = vrsqrt.f32 %v1459_v2  ;;  %vm493_vm12 = vweird.f32 %v1463_v4  ;;  %vm424_vm15 = vmor %vm422_vm8, %vm423_vm11 }
 0x176   :  { %v340_v11 = vpop.xlane.xlu0 %339  ;;  %v465_v25 = vsel %vm464_vm6, %v917_v28, %v461_v46  ;;  %v418_v36 = vmul.f32 %v1449_v31, %v417_v17  ;;  %928 = vrsqrt.f32 %v1461_v6  ;;  %v361_v27 = vpop.xlane.xlu1 %360  ;;  %v376_v49 = vadd.f32 %v346_v9, %v1365_v48  ;;  %vm494_vm1 = vmor %vm492_vm9, %vm493_vm12 }
 0x177   :  { %v815_v19 = vmul.f32 %v776_v35, %v465_v25  ;;  %v439_v41 = vmul.f32 0.5, %v438_v44  ;;  %v488_v33 = vmul.f32 %v1463_v4, %v487_v42  ;;  %v374_v28 = vadd.f32 %v340_v11, %v1371_v56  ;;  %v1531_v44 = vpop.f32.mrf.mxu2  ;;  %v1533_v42 = vpop.f32.mrf.mxu3 }
 0x178   :  { %v419_v57 = vmul.f32 0.5, %v418_v36  ;;  %v392_v40 = vmul.f32 0.015625, %v376_v49  ;;  %v381_v53 = vadd.f32 %v361_v27, %v1393_v3  ;;  %vm472_vm14 = vweird.f32 %v1447_v23 }
 0x179   :  { %v835_v21 = vadd.f32 %v1421_v34, %v815_v19  ;;  %v440_v7 = vsub.f32 1.5, %v439_v41  ;;  %v489_v54 = vmul.f32 0.5, %v488_v33  ;;  %v390_v61 = vmul.f32 0.015625, %v374_v28 }
 0x17a   :  { %v1489_v32 = vpop.eup %924  ;;  %v420_v60 = vsub.f32 1.5, %v419_v57  ;;  %v1508_v39 = vadd.f32 1e-05, %v392_v40  ;;  %vm452_vm3 = vweird.f32 %v1459_v2  ;;  %vm522_vm7 = vweird.f32 %v1461_v6 }
 0x17b   :  { %851 = vst.msk [vmem:[%s1696_s3 + $0x20] sm:$0xff] %vm79_vm0, %v835_v21  ;;  %v441_v48 = vmul.f32 %v1442_v59, %v440_v7  ;;  %v490_v56 = vsub.f32 1.5, %v489_v54  ;;  %v467_v62 = vmul.f32 %v1489_v32, %v1447_v23  ;;  %v1500_v14 = vpop.eup %926  ;;  %v1510_v5 = vadd.f32 1e-05, %v390_v61 }
 0x17c   :  { %v421_v3 = vmul.f32 %v1449_v31, %v420_v60  ;;  %v1512_v35 = vpop.eup %928  ;;  %v447_v47 = vmul.f32 %v1500_v14, %v1459_v2  ;;  %vm473_vm2 = vweird.f32 %v1489_v32  ;;  %930 = vrsqrt.f32 %v1508_v39 }
 0x17d   :  { %v445_v50 = vsel %vm444_vm13, %v1442_v59, %v441_v48  ;;  %v491_v38 = vmul.f32 %v1463_v4, %v490_v56  ;;  %v468_v37 = vmul.f32 %v1489_v32, %v467_v62  ;;  %v355_v45 = vpop.xlane.xlu2 %354  ;;  %v517_v18 = vmul.f32 %v1512_v35, %v1461_v6  ;;  %vm474_vm5 = vmor %vm472_vm14, %vm473_vm2 }
 0x17e   :  { %v349_v30 = vpop.xlane.xlu0 %348  ;;  %v813_v46 = vmul.f32 %v1433_v0, %v445_v50  ;;  %v425_v17 = vsel %vm424_vm15, %v1449_v31, %v421_v3  ;;  %v397_v59 = vmul.f32 0.015625, %v381_v53  ;;  %v448_v31 = vmul.f32 %v1500_v14, %v447_v47 }
 0x17f   :  { %v811_v9 = vmul.f32 %v1428_v1, %v425_v17  ;;  %v495_v11 = vsel %vm494_vm1, %v1463_v4, %v491_v38  ;;  %v469_v0 = vmul.f32 0.5, %v468_v37  ;;  %v518_v36 = vmul.f32 %v1512_v35, %v517_v18  ;;  %v1591_v38 = vpop.f32.mrf.mxu2 }
 0x180   :  { %v833_v25 = vadd.f32 %v1421_v34, %v813_v46  ;;  %v818_v29 = vmul.f32 %v1451_v15, %v495_v11  ;;  %v449_v33 = vmul.f32 0.5, %v448_v31  ;;  %932 = vrsqrt.f32 %v1510_v5 }
 0x181   :  { %v831_v19 = vadd.f32 %v1421_v34, %v811_v9  ;;  %v470_v41 = vsub.f32 1.5, %v469_v0  ;;  %v519_v15 = vmul.f32 0.5, %v518_v36  ;;  %vm453_vm4 = vweird.f32 %v1500_v14 }
 0x182   :  { %849 = vst.msk [vmem:[%s1696_s3 + $0x10] sm:$0xff] %vm79_vm0, %v833_v25  ;;  %v838_v1 = vadd.f32 %v1421_v34, %v818_v29  ;;  %v450_v27 = vsub.f32 1.5, %v449_v33  ;;  %v1557_v57 = vadd.f32 1e-05, %v397_v59  ;;  %vm523_vm6 = vweird.f32 %v1512_v35  ;;  %vm454_vm8 = vmor %vm452_vm3, %vm453_vm4 }
 0x183   :  { %847 = vst.msk [vmem:[%s1696_s3] sm:$0xff] %vm79_vm0, %v831_v19  ;;  %v471_v4 = vmul.f32 %v1489_v32, %v470_v41  ;;  %v520_v49 = vsub.f32 1.5, %v519_v15  ;;  %v379_v28 = vadd.f32 %v355_v45, %v1373_v24  ;;  %v377_v21 = vadd.f32 %v349_v30, %v1379_v51  ;;  %vm524_vm9 = vmor %vm522_vm7, %vm523_vm6 }
 0x184   :  { %854 = vst.msk [vmem:[%s1696_s3 + $0x38] sm:$0xff] %vm79_vm0, %v838_v1  ;;  %v451_v54 = vmul.f32 %v1500_v14, %v450_v27  ;;  %934 = vrsqrt.f32 %v1557_v57  ;;  %v794_v53 = vadd.f32 %v1467_v16, %v1465_v43  ;;  %v1593_v43 = vpop.f32.mrf.mxu3  ;;  %v788_v29 = vadd.f32 %v1397_v13, %v1395_v10 }
 0x185   :  { %v475_v7 = vsel %vm474_vm5, %v1489_v32, %v471_v4  ;;  %v364_v60 = vpop.xlane.xlu2 %363  ;;  %v521_v24 = vmul.f32 %v1512_v35, %v520_v49  ;;  %v395_v51 = vmul.f32 0.015625, %v379_v28  ;;  %v393_v61 = vmul.f32 0.015625, %v377_v21  ;;  %v931_v32 = vpop.eup %930 }
 0x186   :  { %v358_v40 = vpop.xlane.xlu0 %357  ;;  %v816_v23 = vmul.f32 %v1445_v55, %v475_v7  ;;  %v455_v6 = vsel %vm454_vm8, %v1500_v14, %v451_v54  ;;  %v382_v55 = vadd.f32 %v364_v60, %v1381_v52  ;;  %v933_v56 = vpop.eup %932  ;;  %v497_v50 = vmul.f32 %v931_v32, %v1508_v39 }
 0x187   :  { %v380_v48 = vadd.f32 %v358_v40, %v1387_v58  ;;  %v814_v62 = vmul.f32 %v1437_v26, %v455_v6  ;;  %v525_v3 = vsel %vm524_vm9, %v1512_v35, %v521_v24  ;;  %v477_v14 = vmul.f32 %v933_v56, %v1510_v5  ;;  %v689_v1 = vpop.f32.mrf.mxu2 }
 0x188   :  { %v836_v2 = vadd.f32 %v1421_v34, %v816_v23  ;;  %v821_v16 = vmul.f32 %v794_v53, %v525_v3  ;;  %v498_v58 = vmul.f32 %v931_v32, %v497_v50  ;;  %v1601_v26 = vadd.f32 1e-05, %v395_v51 }
 0x189   :  { %v834_v52 = vadd.f32 %v1421_v34, %v814_v62  ;;  %v1603_v35 = vadd.f32 1e-05, %v393_v61  ;;  %v478_v45 = vmul.f32 %v933_v56, %v477_v14  ;;  %v398_v30 = vmul.f32 0.015625, %v382_v55 }
 0x18a   :  { %852 = vst.msk [vmem:[%s1696_s3 + $0x28] sm:$0xff] %vm79_vm0, %v836_v2  ;;  %v935_v37 = vpop.eup %934  ;;  %v841_v47 = vadd.f32 %v1421_v34, %v821_v16  ;;  %v396_v46 = vmul.f32 0.015625, %v380_v48  ;;  %v499_v17 = vmul.f32 0.5, %v498_v58  ;;  %936 = vrsqrt.f32 %v1601_v26 }
 0x18b   :  { %850 = vst.msk [vmem:[%s1696_s3 + $0x18] sm:$0xff] %vm79_vm0, %v834_v52  ;;  %v547_v18 = vmul.f32 %v935_v37, %v1557_v57  ;;  %vm503_vm10 = vweird.f32 %v931_v32  ;;  %v479_v59 = vmul.f32 0.5, %v478_v45  ;;  %938 = vrsqrt.f32 %v1603_v35 }
 0x18c   :  { %857 = vst.msk [vmem:[%s1696_s3 + $0x50] sm:$0xff] %vm79_vm0, %v841_v47  ;;  %v500_v11 = vsub.f32 1.5, %v499_v17  ;;  %v1617_v31 = vadd.f32 1e-05, %v398_v30  ;;  %v1619_v25 = vadd.f32 1e-05, %v396_v46  ;;  %vm483_vm11 = vweird.f32 %v933_v56  ;;  %v802_v15 = vpop.f32.mrf.mxu3 }
 0x18d   :  { %v548_v0 = vmul.f32 %v935_v37, %v547_v18  ;;  %v480_v36 = vsub.f32 1.5, %v479_v59  ;;  %vm502_vm12 = vweird.f32 %v1508_v39  ;;  %vm482_vm14 = vweird.f32 %v1510_v5 }
 0x18e   :  { %v367_v9 = vpop.xlane.xlu0 %366  ;;  %v501_v41 = vmul.f32 %v931_v32, %v500_v11  ;;  %940 = vrsqrt.f32 %v1617_v31  ;;  %vm504_vm13 = vmor %vm502_vm12, %vm503_vm10  ;;  %vm553_vm1 = vweird.f32 %v935_v37  ;;  %vm552_vm2 = vweird.f32 %v1557_v57 }
 0x18f   :  { %v383_v19 = vadd.f32 %v367_v9, %v1391_v63  ;;  %v549_v33 = vmul.f32 0.5, %v548_v0  ;;  %v481_v4 = vmul.f32 %v933_v56, %v480_v36  ;;  %942 = vrsqrt.f32 %v1619_v25  ;;  %vm484_vm15 = vmor %vm482_vm14, %vm483_vm11  ;;  %v692_v14 = vpop.f32.mrf.mxu2 }
 0x190   :  { %v937_v13 = vpop.eup %936  ;;  %v782_v63 = vadd.f32 %v1404_v12, %v1401_v8  ;;  %v505_v27 = vsel %vm504_vm13, %v931_v32, %v501_v41  ;;  %v803_v40 = vadd.f32 %v802_v15, %v689_v1  ;;  %vm554_vm3 = vmor %vm552_vm2, %vm553_vm1  ;;  %vm532_vm6 = vweird.f32 %v1601_v26 }
 0x191   :  { %v399_v10 = vmul.f32 0.015625, %v383_v19  ;;  %v550_v39 = vsub.f32 1.5, %v549_v33  ;;  %v939_v49 = vpop.eup %938  ;;  %v819_v28 = vmul.f32 %v788_v29, %v505_v27  ;;  %v485_v21 = vsel %vm484_vm15, %v933_v56, %v481_v4 }
 0x192   :  { %v527_v7 = vmul.f32 %v937_v13, %v1601_v26  ;;  %v817_v54 = vmul.f32 %v782_v63, %v485_v21  ;;  %v507_v5 = vmul.f32 %v939_v49, %v1603_v35  ;;  %vm533_vm4 = vweird.f32 %v937_v13 }
 0x193   :  { %v551_v60 = vmul.f32 %v935_v37, %v550_v39  ;;  %v839_v23 = vadd.f32 %v1421_v34, %v819_v28  ;;  %v1636_v12 = vadd.f32 1e-05, %v399_v10  ;;  %vm513_vm5 = vweird.f32 %v939_v49  ;;  %vm534_vm7 = vmor %vm532_vm6, %vm533_vm4 }
 0x194   :  { %v528_v8 = vmul.f32 %v937_v13, %v527_v7  ;;  %v941_v24 = vpop.eup %940  ;;  %v837_v51 = vadd.f32 %v1421_v34, %v817_v54  ;;  %v508_v32 = vmul.f32 %v939_v49, %v507_v5  ;;  %v805_v52 = vpop.f32.mrf.mxu3  ;;  %v797_v47 = vadd.f32 %v1533_v42, %v1531_v44 }
 0x195   :  { %v555_v61 = vsel %vm554_vm3, %v935_v37, %v551_v60  ;;  %v943_v53 = vpop.eup %942  ;;  %855 = vst.msk [vmem:[%s1696_s3 + $0x40] sm:$0xff] %vm79_vm0, %v839_v23  ;;  %v557_v55 = vmul.f32 %v941_v24, %v1617_v31  ;;  %944 = vrsqrt.f32 %v1636_v12  ;;  %vm512_vm8 = vweird.f32 %v1603_v35 }
 0x196   :  { %v824_v57 = vmul.f32 %v803_v40, %v555_v61  ;;  %v529_v6 = vmul.f32 0.5, %v528_v8  ;;  %853 = vst.msk [vmem:[%s1696_s3 + $0x30] sm:$0xff] %vm79_vm0, %v837_v51  ;;  %v509_v48 = vmul.f32 0.5, %v508_v32  ;;  %v537_v56 = vmul.f32 %v943_v53, %v1619_v25  ;;  %vm514_vm9 = vmor %vm512_vm8, %vm513_vm5 }
 0x197   :  { %v558_v3 = vmul.f32 %v941_v24, %v557_v55  ;;  %v791_v46 = vadd.f32 %v1408_v20, %v1406_v22  ;;  %vm563_vm10 = vweird.f32 %v941_v24  ;;  %vm543_vm11 = vweird.f32 %v943_v53 }
 0x198   :  { %v844_v2 = vadd.f32 %v1421_v34, %v824_v57  ;;  %v530_v62 = vsub.f32 1.5, %v529_v6  ;;  %v510_v50 = vsub.f32 1.5, %v509_v48  ;;  %v538_v16 = vmul.f32 %v943_v53, %v537_v56 }
 0x199   :  { %v559_v37 = vmul.f32 0.5, %v558_v3  ;;  %vm562_vm12 = vweird.f32 %v1617_v31  ;;  %v806_v35 = vadd.f32 %v805_v52, %v692_v14  ;;  %vm542_vm14 = vweird.f32 %v1619_v25 }
 0x19a   :  { %860 = vst.msk [vmem:[%s1696_s3 + $0x68] sm:$0xff] %vm79_vm0, %v844_v2  ;;  %v531_v58 = vmul.f32 %v937_v13, %v530_v62  ;;  %v511_v45 = vmul.f32 %v939_v49, %v510_v50  ;;  %v539_v30 = vmul.f32 0.5, %v538_v16  ;;  %vm564_vm13 = vmor %vm562_vm12, %vm563_vm10  ;;  %v800_v20 = vadd.f32 %v1593_v43, %v1591_v38  ;;  %v695_v43 = vpop.f32.mrf.mxu2 }
 0x19b   :  { %v560_v18 = vsub.f32 1.5, %v559_v37  ;;  %v945_v59 = vpop.eup %944  ;;  %vm544_vm15 = vmor %vm542_vm14, %vm543_vm11  ;;  %vm572_vm2 = vweird.f32 %v1636_v12 }
 0x19c   :  { %v535_v17 = vsel %vm534_vm7, %v937_v13, %v531_v58  ;;  %v515_v26 = vsel %vm514_vm9, %v939_v49, %v511_v45  ;;  %v540_v11 = vsub.f32 1.5, %v539_v30  ;;  %v567_v42 = vmul.f32 %v945_v59, %v1636_v12  ;;  %v808_v15 = vpop.f32.mrf.mxu3 }
 0x19d   :  { %v822_v9 = vmul.f32 %v797_v47, %v535_v17  ;;  %v820_v0 = vmul.f32 %v791_v46, %v515_v26  ;;  %v561_v44 = vmul.f32 %v941_v24, %v560_v18  ;;  %vm573_vm1 = vweird.f32 %v945_v59 }
 0x19e   :  { %v541_v22 = vmul.f32 %v943_v53, %v540_v11  ;;  %v568_v41 = vmul.f32 %v945_v59, %v567_v42  ;;  %v809_v63 = vadd.f32 %v808_v15, %v695_v43  ;;  %vm574_vm3 = vmor %vm572_vm2, %vm573_vm1 }
 0x19f   :  { %v842_v29 = vadd.f32 %v1421_v34, %v822_v9  ;;  %v840_v36 = vadd.f32 %v1421_v34, %v820_v0  ;;  %v565_v19 = vsel %vm564_vm13, %v941_v24, %v561_v44 }
 0x1a0   :  { %v825_v31 = vmul.f32 %v806_v35, %v565_v19  ;;  %v545_v33 = vsel %vm544_vm15, %v943_v53, %v541_v22  ;;  %v569_v1 = vmul.f32 0.5, %v568_v41 }
 0x1a1   :  { %858 = vst.msk [vmem:[%s1696_s3 + $0x58] sm:$0xff] %vm79_vm0, %v842_v29  ;;  %v823_v25 = vmul.f32 %v800_v20, %v545_v33 }
 0x1a2   :  { %856 = vst.msk [vmem:[%s1696_s3 + $0x48] sm:$0xff] %vm79_vm0, %v840_v36  ;;  %v845_v38 = vadd.f32 %v1421_v34, %v825_v31  ;;  %v570_v10 = vsub.f32 1.5, %v569_v1 }
 0x1a3   :  { %v843_v4 = vadd.f32 %v1421_v34, %v823_v25 }
 0x1a4   :  { %861 = vst.msk [vmem:[%s1696_s3 + $0x70] sm:$0xff] %vm79_vm0, %v845_v38  ;;  %v571_v13 = vmul.f32 %v945_v59, %v570_v10 }
 0x1a5   :  { %859 = vst.msk [vmem:[%s1696_s3 + $0x60] sm:$0xff] %vm79_vm0, %v843_v4 }
 0x1a6   :  { %v575_v27 = vsel %vm574_vm3, %v945_v59, %v571_v13 }
 0x1a7   :  { %v826_v39 = vmul.f32 %v809_v63, %v575_v27 }
 0x1a9   :  { %v846_v49 = vadd.f32 %v1421_v34, %v826_v39 }
 0x1ab   :  { %862 = vst.msk [vmem:[%s1696_s3 + $0x78] sm:$0xff] %vm79_vm0, %v846_v49 }
 0x1ac   :  { %867 = vsyncpa [#allocation3], 1 }
 0x1ad   :  { %868 = vsyncpa [#allocation5], 1 }

</bundles_post_ra>
